<compile_context>
chip_gen: v6e
topology: v6e:2x2x1
jax: 0.10.0
libtpu: 0.0.40
codegen_flags: <defaults>
</compile_context>

<pallas_src>
import math

import jax
import jax.numpy as jnp
from jax import lax
from jax.experimental import pallas as pl
from jax.experimental.pallas import tpu as pltpu

# ---------------- model hyperparameters (small, synthetic) ----------------
B = 2          # batch
S = 8          # sequence length
D = 32         # d_model
NHEAD = 4      # attention heads
HD = D // NHEAD
DFF = 64       # feed-forward hidden dim
N_LAYERS = 2
LN_EPS = 1e-5

T = B * S                      # token rows in the fused activation slab
W3 = 3 * HD                    # per-head packed q|k|v column group width
VW = max(3 * D, DFF)           # packed bias/LN vector slab width
# row indices inside the packed per-layer vector slab
_BQKV, _BO, _B1, _B2, _G1, _BE1, _G2, _BE2 = range(8)
NVEC = 8


def _layernorm(x, gamma, beta):
    mean = jnp.mean(x, axis=-1, keepdims=True)
    var = jnp.mean((x - mean) ** 2, axis=-1, keepdims=True)
    return (x - mean) * lax.rsqrt(var + LN_EPS) * gamma + beta


def encoder_stack_kernel(x_ref, wqkv_ref, wo_ref, w1_ref, w2_ref, vec_ref, o_ref):
    """Entire N_LAYERS encoder stack on the [T, D] activation slab."""
    h = x_ref[...]                                     # [T, D] f32

    for l in range(N_LAYERS):                          # static unroll over layers
        wqkv = wqkv_ref[l]                             # [D, 3D]  head-major columns
        wo = wo_ref[l]                                 # [D, D]
        w1 = w1_ref[l]                                 # [D, DFF]
        w2 = w2_ref[l]                                 # [DFF, D]
        vec = vec_ref[l]                               # [NVEC, VW]

        bqkv = vec[_BQKV:_BQKV + 1, :3 * D]            # [1, 3D] head-major, q pre-scaled
        bo = vec[_BO:_BO + 1, :D]
        b1 = vec[_B1:_B1 + 1, :DFF]
        b2 = vec[_B2:_B2 + 1, :D]
        g1 = vec[_G1:_G1 + 1, :D]
        be1 = vec[_BE1:_BE1 + 1, :D]
        g2 = vec[_G2:_G2 + 1, :D]
        be2 = vec[_BE2:_BE2 + 1, :D]

        # ---- fused Q/K/V projection: one MXU push, one bias add.
        #      1/sqrt(HD) is already folded into the Q columns / bias. ----
        qkv = jnp.dot(h, wqkv, preferred_element_type=jnp.float32) + bqkv   # [T, 3D]

        # ---- head-batched multi-head self-attention: one contiguous slice per
        #      head, heads stacked into the batch dim via leading-dim reshapes
        #      only, then ONE score einsum + ONE context einsum (batch=NHEAD*B).
        qkv_h = jnp.stack([qkv[:, hh * W3:(hh + 1) * W3]
                           for hh in range(NHEAD)])            # (NHEAD, T, 3*HD)
        qkv_h = qkv_h.reshape(NHEAD * B, S, W3)                # batch idx = h*B + b
        qh = qkv_h[:, :, 0:HD]
        kh = qkv_h[:, :, HD:2 * HD]
        vh = qkv_h[:, :, 2 * HD:3 * HD]

        s = jnp.einsum("bqd,bkd->bqk", qh, kh,
                       preferred_element_type=jnp.float32)     # (NHEAD*B, S, S)
        s = s - jnp.max(s, axis=-1, keepdims=True)
        p = jnp.exp(s)
        p = p * pl.reciprocal(jnp.sum(p, axis=-1, keepdims=True), approx=True)
        ctx = jnp.einsum("bqk,bkd->bqd", p, vh,
                         preferred_element_type=jnp.float32)   # (NHEAD*B, S, HD)

        # ---- re-interleave heads along lanes and apply the FULL output
        #      projection with a single K=D MXU push ----
        ctx = ctx.reshape(NHEAD, T, HD)
        ctx = jnp.concatenate([ctx[hh] for hh in range(NHEAD)], axis=-1)    # [T, D]
        attn = jnp.dot(ctx, wo, preferred_element_type=jnp.float32) + bo

        # ---- residual + LayerNorm1 ----
        h = _layernorm(h + attn, g1, be1)

        # ---- feed-forward (ReLU) + residual + LayerNorm2 ----
        ff = jnp.maximum(jnp.dot(h, w1, preferred_element_type=jnp.float32) + b1, 0.0)
        ff = jnp.dot(ff, w2, preferred_element_type=jnp.float32) + b2
        h = _layernorm(h + ff, g2, be2)

    o_ref[...] = h.astype(o_ref.dtype)


def transformer_encoder(x, stacked, key_padding_mask=None, attn_mask=None):
    """Whole encoder stack in a single Pallas kernel launch (no grid)."""
    # TODO(synk): key_padding_mask / attn_mask accepted for signature parity
    #             but not applied (both None in this run).
    b, s, d = x.shape
    flops = 2 * N_LAYERS * (T * D * 3 * D          # fused QKV projection
                            + 2 * B * NHEAD * S * S * HD   # scores + context
                            + T * D * D            # output projection
                            + 2 * T * D * DFF)     # FFN (w1 + w2)
    transcendentals = N_LAYERS * (B * NHEAD * S * S + 4 * T)   # exp + LN rsqrt + recips
    weight_bytes = N_LAYERS * (D * 3 * D + D * D + D * DFF + DFF * D + NVEC * VW) * 4
    bytes_accessed = 2 * T * D * 4 + weight_bytes

    vmem_spec = pl.BlockSpec(memory_space=pltpu.MemorySpace.VMEM)
    out = pl.pallas_call(
        encoder_stack_kernel,
        out_shape=jax.ShapeDtypeStruct((b * s, d), x.dtype),
        in_specs=[vmem_spec] * 6,
        out_specs=vmem_spec,
        cost_estimate=pl.CostEstimate(flops=flops,
                                      transcendentals=transcendentals,
                                      bytes_accessed=bytes_accessed),
    )(x.reshape(b * s, d), stacked["wqkv"], stacked["wo"],
      stacked["w1"], stacked["w2"], stacked["vec"])
    return out.reshape(b, s, d)


# ---------------- parameter construction / packing ----------------
def init_layer_params(key):
    ks = jax.random.split(key, 12)

    def w(k, shape, fan_in):
        return jax.random.normal(k, shape, jnp.float32) / math.sqrt(fan_in)

    def bias(k, dim):
        return 0.1 * jax.random.normal(k, (dim,), jnp.float32)

    return {
        "wq": w(ks[0], (D, D), D),     "bq": bias(ks[6], D),
        "wk": w(ks[1], (D, D), D),     "bk": bias(ks[7], D),
        "wv": w(ks[2], (D, D), D),     "bv": bias(ks[8], D),
        "wo": w(ks[3], (D, D), D),     "bo": bias(ks[9], D),
        "w1": w(ks[4], (D, DFF), D),   "b1": bias(ks[10], DFF),
        "w2": w(ks[5], (DFF, D), DFF), "b2": bias(ks[11], D),
        "g1": jnp.ones((D,), jnp.float32),  "be1": jnp.zeros((D,), jnp.float32),
        "g2": jnp.ones((D,), jnp.float32),  "be2": jnp.zeros((D,), jnp.float32),
    }


def _pad_row(v):
    return jnp.pad(v, (0, VW - v.shape[0]))


def stack_params(layer_params):
    """Stack per-layer params along a layer axis.

    Host-side repacking (free at runtime):
      * wqkv columns head-major: [q_h0|k_h0|v_h0 | q_h1|k_h1|v_h1 | ...]
      * 1/sqrt(HD) softmax scale folded into the Q columns and Q bias
      * all 12 small bias / LayerNorm vectors packed into one (L, NVEC, VW) slab
    """
    scale = 1.0 / math.sqrt(HD)

    def pack_wqkv(p):
        wq, wk, wv = p["wq"] * scale, p["wk"], p["wv"]
        cols = []
        for hh in range(NHEAD):
            lo = hh * HD
            cols += [wq[:, lo:lo + HD], wk[:, lo:lo + HD], wv[:, lo:lo + HD]]
        return jnp.concatenate(cols, axis=1)                    # (D, 3D)

    def pack_bqkv(p):
        bq, bk, bv = p["bq"] * scale, p["bk"], p["bv"]
        rows = []
        for hh in range(NHEAD):
            lo = hh * HD
            rows += [bq[lo:lo + HD], bk[lo:lo + HD], bv[lo:lo + HD]]
        return jnp.concatenate(rows)                            # (3D,)

    wqkv = jnp.stack([pack_wqkv(p) for p in layer_params])      # (L, D, 3D)
    wo = jnp.stack([p["wo"] for p in layer_params])             # (L, D, D)
    w1 = jnp.stack([p["w1"] for p in layer_params])             # (L, D, DFF)
    w2 = jnp.stack([p["w2"] for p in layer_params])             # (L, DFF, D)
    vec = jnp.stack([
        jnp.stack([
            _pad_row(pack_bqkv(p)),
            _pad_row(p["bo"]), _pad_row(p["b1"]), _pad_row(p["b2"]),
            _pad_row(p["g1"]), _pad_row(p["be1"]),
            _pad_row(p["g2"]), _pad_row(p["be2"]),
        ])
        for p in layer_params])                                  # (L, NVEC, VW)
    return {"wqkv": wqkv, "wo": wo, "w1": w1, "w2": w2, "vec": vec}


# ---------------- pure-JAX reference (for correctness check) ----------------
def transformer_encoder_ref(x, layer_params):
    out = x
    for p in layer_params:
        q = out @ p["wq"] + p["bq"]
        k = out @ p["wk"] + p["bk"]
        v = out @ p["wv"] + p["bv"]

        def split(t):
            return t.reshape(B, S, NHEAD, HD).transpose(0, 2, 1, 3)

        qh, kh, vh = split(q), split(k), split(v)
        s = jnp.einsum("bhqd,bhkd->bhqk", qh, kh) / math.sqrt(HD)
        pr = jax.nn.softmax(s, axis=-1)
        oh = jnp.einsum("bhqk,bhkd->bhqd", pr, vh)
        oh = oh.transpose(0, 2, 1, 3).reshape(B, S, D)
        attn = oh @ p["wo"] + p["bo"]
        y = _layernorm(out + attn, p["g1"], p["be1"])
        ff = jax.nn.relu(y @ p["w1"] + p["b1"]) @ p["w2"] + p["b2"]
        out = _layernorm(y + ff, p["g2"], p["be2"])
    return out


if __name__ == "__main__":
    root = jax.random.PRNGKey(0)
    kx, *kls = jax.random.split(root, 1 + N_LAYERS)

    x = jax.random.normal(kx, (B, S, D), jnp.float32)
    layer_params = [init_layer_params(k) for k in kls]
    stacked = stack_params(layer_params)

    out = jax.block_until_ready(transformer_encoder(x, stacked))
    assert out.shape == (B, S, D) and out.dtype == jnp.float32
    assert bool(jnp.all(jnp.isfinite(out)))

    ref = transformer_encoder_ref(x, layer_params)
    err = float(jnp.max(jnp.abs(out - ref)))
    assert err < 5e-2, f"kernel/reference mismatch: max abs err = {err}"

    print("KERNEL_OK")
</pallas_src>

<mosaic_0001>
module attributes {stable_mosaic.version = 11 : i64} {
  func.func @encoder_stack_kernel(%arg0: memref<16x32xf32, #tpu.memory_space<vmem>>, %arg1: memref<2x32x96xf32, #tpu.memory_space<vmem>>, %arg2: memref<2x32x32xf32, #tpu.memory_space<vmem>>, %arg3: memref<2x32x64xf32, #tpu.memory_space<vmem>>, %arg4: memref<2x64x32xf32, #tpu.memory_space<vmem>>, %arg5: memref<2x8x96xf32, #tpu.memory_space<vmem>>, %arg6: memref<16x32xf32, #tpu.memory_space<vmem>>) attributes {dimension_semantics = [], scalar_prefetch = 0 : i64, scratch_operands = 0 : i64, tpu.core_type = #tpu.core_type<tc>} {
    %c0 = arith.constant 0 : index
    %c0_0 = arith.constant 0 : index
    %0 = vector.load %arg0[%c0, %c0_0] : memref<16x32xf32, #tpu.memory_space<vmem>>, vector<16x32xf32>
    %c0_1 = arith.constant 0 : index
    %c0_2 = arith.constant 0 : index
    %c0_3 = arith.constant 0 : index
    %1 = vector.load %arg1[%c0_1, %c0_2, %c0_3] : memref<2x32x96xf32, #tpu.memory_space<vmem>>, vector<1x32x96xf32>
    %2 = vector.shape_cast %1 : vector<1x32x96xf32> to vector<32x96xf32>
    %c0_4 = arith.constant 0 : index
    %c0_5 = arith.constant 0 : index
    %c0_6 = arith.constant 0 : index
    %3 = vector.load %arg2[%c0_4, %c0_5, %c0_6] : memref<2x32x32xf32, #tpu.memory_space<vmem>>, vector<1x32x32xf32>
    %4 = vector.shape_cast %3 : vector<1x32x32xf32> to vector<32x32xf32>
    %c0_7 = arith.constant 0 : index
    %c0_8 = arith.constant 0 : index
    %c0_9 = arith.constant 0 : index
    %5 = vector.load %arg3[%c0_7, %c0_8, %c0_9] : memref<2x32x64xf32, #tpu.memory_space<vmem>>, vector<1x32x64xf32>
    %6 = vector.shape_cast %5 : vector<1x32x64xf32> to vector<32x64xf32>
    %c0_10 = arith.constant 0 : index
    %c0_11 = arith.constant 0 : index
    %c0_12 = arith.constant 0 : index
    %7 = vector.load %arg4[%c0_10, %c0_11, %c0_12] : memref<2x64x32xf32, #tpu.memory_space<vmem>>, vector<1x64x32xf32>
    %8 = vector.shape_cast %7 : vector<1x64x32xf32> to vector<64x32xf32>
    %c0_13 = arith.constant 0 : index
    %c0_14 = arith.constant 0 : index
    %c0_15 = arith.constant 0 : index
    %9 = vector.load %arg5[%c0_13, %c0_14, %c0_15] : memref<2x8x96xf32, #tpu.memory_space<vmem>>, vector<1x8x96xf32>
    %10 = vector.shape_cast %9 : vector<1x8x96xf32> to vector<8x96xf32>
    %11 = vector.extract_strided_slice %10 {offsets = [0, 0], sizes = [1, 96], strides = [1, 1]} : vector<8x96xf32> to vector<1x96xf32>
    %12 = vector.extract_strided_slice %10 {offsets = [1, 0], sizes = [1, 32], strides = [1, 1]} : vector<8x96xf32> to vector<1x32xf32>
    %13 = vector.extract_strided_slice %10 {offsets = [2, 0], sizes = [1, 64], strides = [1, 1]} : vector<8x96xf32> to vector<1x64xf32>
    %14 = vector.extract_strided_slice %10 {offsets = [3, 0], sizes = [1, 32], strides = [1, 1]} : vector<8x96xf32> to vector<1x32xf32>
    %15 = vector.extract_strided_slice %10 {offsets = [4, 0], sizes = [1, 32], strides = [1, 1]} : vector<8x96xf32> to vector<1x32xf32>
    %16 = vector.extract_strided_slice %10 {offsets = [5, 0], sizes = [1, 32], strides = [1, 1]} : vector<8x96xf32> to vector<1x32xf32>
    %17 = vector.extract_strided_slice %10 {offsets = [6, 0], sizes = [1, 32], strides = [1, 1]} : vector<8x96xf32> to vector<1x32xf32>
    %18 = vector.extract_strided_slice %10 {offsets = [7, 0], sizes = [1, 32], strides = [1, 1]} : vector<8x96xf32> to vector<1x32xf32>
    %cst = arith.constant dense<0.000000e+00> : vector<16x96xf32>
    %19 = tpu.matmul %0, %2, %cst {dimension_numbers = #tpu.dot_dimension_numbers<[1], [0], [0], [1], [0, 0, 1, 1], [], []>} : vector<16x32xf32>, vector<32x96xf32>, vector<16x96xf32> -> vector<16x96xf32>
    %20 = vector.broadcast %11 : vector<1x96xf32> to vector<16x96xf32>
    %21 = arith.addf %19, %20 : vector<16x96xf32>
    %22 = vector.extract_strided_slice %21 {offsets = [0, 0], sizes = [16, 24], strides = [1, 1]} : vector<16x96xf32> to vector<16x24xf32>
    %23 = vector.extract_strided_slice %21 {offsets = [0, 24], sizes = [16, 24], strides = [1, 1]} : vector<16x96xf32> to vector<16x24xf32>
    %24 = vector.extract_strided_slice %21 {offsets = [0, 48], sizes = [16, 24], strides = [1, 1]} : vector<16x96xf32> to vector<16x24xf32>
    %25 = vector.extract_strided_slice %21 {offsets = [0, 72], sizes = [16, 24], strides = [1, 1]} : vector<16x96xf32> to vector<16x24xf32>
    %26 = vector.shape_cast %22 : vector<16x24xf32> to vector<1x16x24xf32>
    %27 = vector.shape_cast %23 : vector<16x24xf32> to vector<1x16x24xf32>
    %28 = vector.shape_cast %24 : vector<16x24xf32> to vector<1x16x24xf32>
    %29 = vector.shape_cast %25 : vector<16x24xf32> to vector<1x16x24xf32>
    %30 = tpu.concatenate %26, %27, %28, %29 in 0 : vector<1x16x24xf32>, vector<1x16x24xf32>, vector<1x16x24xf32>, vector<1x16x24xf32> -> vector<4x16x24xf32>
    %31 = vector.shape_cast %30 : vector<4x16x24xf32> to vector<8x8x24xf32>
    %32 = vector.extract_strided_slice %31 {offsets = [0, 0, 0], sizes = [8, 8, 8], strides = [1, 1, 1]} : vector<8x8x24xf32> to vector<8x8x8xf32>
    %33 = vector.extract_strided_slice %31 {offsets = [0, 0, 8], sizes = [8, 8, 8], strides = [1, 1, 1]} : vector<8x8x24xf32> to vector<8x8x8xf32>
    %34 = vector.extract_strided_slice %31 {offsets = [0, 0, 16], sizes = [8, 8, 8], strides = [1, 1, 1]} : vector<8x8x24xf32> to vector<8x8x8xf32>
    "tpu.trace_start"() <{level = 10 : i32, message = "bqd,bkd->bqk"}> : () -> ()
    %cst_16 = arith.constant dense<0.000000e+00> : vector<8x8x8xf32>
    %35 = tpu.matmul %32, %33, %cst_16 {dimension_numbers = #tpu.dot_dimension_numbers<[2], [2], [1], [1], [0, 0, 0, 1, 1, 1], [0], [0]>} : vector<8x8x8xf32>, vector<8x8x8xf32>, vector<8x8x8xf32> -> vector<8x8x8xf32>
    "tpu.trace_stop"() : () -> ()
    %cst_17 = arith.constant dense<0xFF800000> : vector<8x8xf32>
    %36 = vector.multi_reduction <maximumf>, %35, %cst_17 [2] : vector<8x8x8xf32> to vector<8x8xf32>
    %37 = vector.shape_cast %36 : vector<8x8xf32> to vector<8x8x1xf32>
    %38 = vector.broadcast %37 : vector<8x8x1xf32> to vector<8x8x8xf32>
    %39 = arith.subf %35, %38 : vector<8x8x8xf32>
    %40 = math.exp %39 : vector<8x8x8xf32>
    %cst_18 = arith.constant dense<0.000000e+00> : vector<8x8xf32>
    %41 = vector.multi_reduction <add>, %40, %cst_18 [2] : vector<8x8x8xf32> to vector<8x8xf32>
    %42 = vector.shape_cast %41 : vector<8x8xf32> to vector<8x8x1xf32>
    %43 = tpu.reciprocal %42 {approx = true} : vector<8x8x1xf32> -> vector<8x8x1xf32>
    %44 = vector.broadcast %43 : vector<8x8x1xf32> to vector<8x8x8xf32>
    %45 = arith.mulf %40, %44 : vector<8x8x8xf32>
    "tpu.trace_start"() <{level = 10 : i32, message = "bqk,bkd->bqd"}> : () -> ()
    %cst_19 = arith.constant dense<0.000000e+00> : vector<8x8x8xf32>
    %46 = tpu.matmul %45, %34, %cst_19 {dimension_numbers = #tpu.dot_dimension_numbers<[2], [1], [1], [2], [0, 0, 0, 1, 1, 2], [0], [0]>} : vector<8x8x8xf32>, vector<8x8x8xf32>, vector<8x8x8xf32> -> vector<8x8x8xf32>
    "tpu.trace_stop"() : () -> ()
    %47 = vector.shape_cast %46 : vector<8x8x8xf32> to vector<4x16x8xf32>
    %48 = vector.extract_strided_slice %47 {offsets = [0, 0, 0], sizes = [1, 16, 8], strides = [1, 1, 1]} : vector<4x16x8xf32> to vector<1x16x8xf32>
    %49 = vector.shape_cast %48 : vector<1x16x8xf32> to vector<16x8xf32>
    %50 = vector.extract_strided_slice %47 {offsets = [1, 0, 0], sizes = [1, 16, 8], strides = [1, 1, 1]} : vector<4x16x8xf32> to vector<1x16x8xf32>
    %51 = vector.shape_cast %50 : vector<1x16x8xf32> to vector<16x8xf32>
    %52 = vector.extract_strided_slice %47 {offsets = [2, 0, 0], sizes = [1, 16, 8], strides = [1, 1, 1]} : vector<4x16x8xf32> to vector<1x16x8xf32>
    %53 = vector.shape_cast %52 : vector<1x16x8xf32> to vector<16x8xf32>
    %54 = vector.extract_strided_slice %47 {offsets = [3, 0, 0], sizes = [1, 16, 8], strides = [1, 1, 1]} : vector<4x16x8xf32> to vector<1x16x8xf32>
    %55 = vector.shape_cast %54 : vector<1x16x8xf32> to vector<16x8xf32>
    %56 = tpu.concatenate %49, %51, %53, %55 in 1 : vector<16x8xf32>, vector<16x8xf32>, vector<16x8xf32>, vector<16x8xf32> -> vector<16x32xf32>
    %cst_20 = arith.constant dense<0.000000e+00> : vector<16x32xf32>
    %57 = tpu.matmul %56, %4, %cst_20 {dimension_numbers = #tpu.dot_dimension_numbers<[1], [0], [0], [1], [0, 0, 1, 1], [], []>} : vector<16x32xf32>, vector<32x32xf32>, vector<16x32xf32> -> vector<16x32xf32>
    %58 = vector.broadcast %12 : vector<1x32xf32> to vector<16x32xf32>
    %59 = arith.addf %57, %58 : vector<16x32xf32>
    %60 = arith.addf %0, %59 : vector<16x32xf32>
    %cst_21 = arith.constant dense<0.000000e+00> : vector<16xf32>
    %61 = vector.multi_reduction <add>, %60, %cst_21 [1] : vector<16x32xf32> to vector<16xf32>
    %62 = vector.shape_cast %61 : vector<16xf32> to vector<16x1xf32>
    %cst_22 = arith.constant 3.200000e+01 : f32
    %63 = vector.broadcast %cst_22 : f32 to vector<16x1xf32>
    %64 = arith.divf %62, %63 : vector<16x1xf32>
    %65 = vector.broadcast %64 : vector<16x1xf32> to vector<16x32xf32>
    %66 = arith.subf %60, %65 : vector<16x32xf32>
    %67 = arith.mulf %66, %66 : vector<16x32xf32>
    %cst_23 = arith.constant dense<0.000000e+00> : vector<16xf32>
    %68 = vector.multi_reduction <add>, %67, %cst_23 [1] : vector<16x32xf32> to vector<16xf32>
    %69 = vector.shape_cast %68 : vector<16xf32> to vector<16x1xf32>
    %cst_24 = arith.constant 3.200000e+01 : f32
    %70 = vector.broadcast %cst_24 : f32 to vector<16x1xf32>
    %71 = arith.divf %69, %70 : vector<16x1xf32>
    %72 = vector.broadcast %64 : vector<16x1xf32> to vector<16x32xf32>
    %73 = arith.subf %60, %72 : vector<16x32xf32>
    %cst_25 = arith.constant 9.99999974E-6 : f32
    %74 = vector.broadcast %cst_25 : f32 to vector<16x1xf32>
    %75 = arith.addf %71, %74 : vector<16x1xf32>
    %76 = math.rsqrt %75 : vector<16x1xf32>
    %77 = vector.broadcast %76 : vector<16x1xf32> to vector<16x32xf32>
    %78 = arith.mulf %73, %77 : vector<16x32xf32>
    %79 = vector.broadcast %15 : vector<1x32xf32> to vector<16x32xf32>
    %80 = arith.mulf %78, %79 : vector<16x32xf32>
    %81 = vector.broadcast %16 : vector<1x32xf32> to vector<16x32xf32>
    %82 = arith.addf %80, %81 : vector<16x32xf32>
    %cst_26 = arith.constant dense<0.000000e+00> : vector<16x64xf32>
    %83 = tpu.matmul %82, %6, %cst_26 {dimension_numbers = #tpu.dot_dimension_numbers<[1], [0], [0], [1], [0, 0, 1, 1], [], []>} : vector<16x32xf32>, vector<32x64xf32>, vector<16x64xf32> -> vector<16x64xf32>
    %84 = vector.broadcast %13 : vector<1x64xf32> to vector<16x64xf32>
    %85 = arith.addf %83, %84 : vector<16x64xf32>
    %cst_27 = arith.constant 0.000000e+00 : f32
    %86 = vector.broadcast %cst_27 : f32 to vector<16x64xf32>
    %87 = arith.maximumf %85, %86 : vector<16x64xf32>
    %cst_28 = arith.constant dense<0.000000e+00> : vector<16x32xf32>
    %88 = tpu.matmul %87, %8, %cst_28 {dimension_numbers = #tpu.dot_dimension_numbers<[1], [0], [0], [1], [0, 0, 1, 1], [], []>} : vector<16x64xf32>, vector<64x32xf32>, vector<16x32xf32> -> vector<16x32xf32>
    %89 = vector.broadcast %14 : vector<1x32xf32> to vector<16x32xf32>
    %90 = arith.addf %88, %89 : vector<16x32xf32>
    %91 = arith.addf %82, %90 : vector<16x32xf32>
    %cst_29 = arith.constant dense<0.000000e+00> : vector<16xf32>
    %92 = vector.multi_reduction <add>, %91, %cst_29 [1] : vector<16x32xf32> to vector<16xf32>
    %93 = vector.shape_cast %92 : vector<16xf32> to vector<16x1xf32>
    %cst_30 = arith.constant 3.200000e+01 : f32
    %94 = vector.broadcast %cst_30 : f32 to vector<16x1xf32>
    %95 = arith.divf %93, %94 : vector<16x1xf32>
    %96 = vector.broadcast %95 : vector<16x1xf32> to vector<16x32xf32>
    %97 = arith.subf %91, %96 : vector<16x32xf32>
    %98 = arith.mulf %97, %97 : vector<16x32xf32>
    %cst_31 = arith.constant dense<0.000000e+00> : vector<16xf32>
    %99 = vector.multi_reduction <add>, %98, %cst_31 [1] : vector<16x32xf32> to vector<16xf32>
    %100 = vector.shape_cast %99 : vector<16xf32> to vector<16x1xf32>
    %cst_32 = arith.constant 3.200000e+01 : f32
    %101 = vector.broadcast %cst_32 : f32 to vector<16x1xf32>
    %102 = arith.divf %100, %101 : vector<16x1xf32>
    %103 = vector.broadcast %95 : vector<16x1xf32> to vector<16x32xf32>
    %104 = arith.subf %91, %103 : vector<16x32xf32>
    %cst_33 = arith.constant 9.99999974E-6 : f32
    %105 = vector.broadcast %cst_33 : f32 to vector<16x1xf32>
    %106 = arith.addf %102, %105 : vector<16x1xf32>
    %107 = math.rsqrt %106 : vector<16x1xf32>
    %108 = vector.broadcast %107 : vector<16x1xf32> to vector<16x32xf32>
    %109 = arith.mulf %104, %108 : vector<16x32xf32>
    %110 = vector.broadcast %17 : vector<1x32xf32> to vector<16x32xf32>
    %111 = arith.mulf %109, %110 : vector<16x32xf32>
    %112 = vector.broadcast %18 : vector<1x32xf32> to vector<16x32xf32>
    %113 = arith.addf %111, %112 : vector<16x32xf32>
    %c1 = arith.constant 1 : index
    %c0_34 = arith.constant 0 : index
    %c0_35 = arith.constant 0 : index
    %114 = vector.load %arg1[%c1, %c0_34, %c0_35] : memref<2x32x96xf32, #tpu.memory_space<vmem>>, vector<1x32x96xf32>
    %115 = vector.shape_cast %114 : vector<1x32x96xf32> to vector<32x96xf32>
    %c1_36 = arith.constant 1 : index
    %c0_37 = arith.constant 0 : index
    %c0_38 = arith.constant 0 : index
    %116 = vector.load %arg2[%c1_36, %c0_37, %c0_38] : memref<2x32x32xf32, #tpu.memory_space<vmem>>, vector<1x32x32xf32>
    %117 = vector.shape_cast %116 : vector<1x32x32xf32> to vector<32x32xf32>
    %c1_39 = arith.constant 1 : index
    %c0_40 = arith.constant 0 : index
    %c0_41 = arith.constant 0 : index
    %118 = vector.load %arg3[%c1_39, %c0_40, %c0_41] : memref<2x32x64xf32, #tpu.memory_space<vmem>>, vector<1x32x64xf32>
    %119 = vector.shape_cast %118 : vector<1x32x64xf32> to vector<32x64xf32>
    %c1_42 = arith.constant 1 : index
    %c0_43 = arith.constant 0 : index
    %c0_44 = arith.constant 0 : index
    %120 = vector.load %arg4[%c1_42, %c0_43, %c0_44] : memref<2x64x32xf32, #tpu.memory_space<vmem>>, vector<1x64x32xf32>
    %121 = vector.shape_cast %120 : vector<1x64x32xf32> to vector<64x32xf32>
    %c1_45 = arith.constant 1 : index
    %c0_46 = arith.constant 0 : index
    %c0_47 = arith.constant 0 : index
    %122 = vector.load %arg5[%c1_45, %c0_46, %c0_47] : memref<2x8x96xf32, #tpu.memory_space<vmem>>, vector<1x8x96xf32>
    %123 = vector.shape_cast %122 : vector<1x8x96xf32> to vector<8x96xf32>
    %124 = vector.extract_strided_slice %123 {offsets = [0, 0], sizes = [1, 96], strides = [1, 1]} : vector<8x96xf32> to vector<1x96xf32>
    %125 = vector.extract_strided_slice %123 {offsets = [1, 0], sizes = [1, 32], strides = [1, 1]} : vector<8x96xf32> to vector<1x32xf32>
    %126 = vector.extract_strided_slice %123 {offsets = [2, 0], sizes = [1, 64], strides = [1, 1]} : vector<8x96xf32> to vector<1x64xf32>
    %127 = vector.extract_strided_slice %123 {offsets = [3, 0], sizes = [1, 32], strides = [1, 1]} : vector<8x96xf32> to vector<1x32xf32>
    %128 = vector.extract_strided_slice %123 {offsets = [4, 0], sizes = [1, 32], strides = [1, 1]} : vector<8x96xf32> to vector<1x32xf32>
    %129 = vector.extract_strided_slice %123 {offsets = [5, 0], sizes = [1, 32], strides = [1, 1]} : vector<8x96xf32> to vector<1x32xf32>
    %130 = vector.extract_strided_slice %123 {offsets = [6, 0], sizes = [1, 32], strides = [1, 1]} : vector<8x96xf32> to vector<1x32xf32>
    %131 = vector.extract_strided_slice %123 {offsets = [7, 0], sizes = [1, 32], strides = [1, 1]} : vector<8x96xf32> to vector<1x32xf32>
    %cst_48 = arith.constant dense<0.000000e+00> : vector<16x96xf32>
    %132 = tpu.matmul %113, %115, %cst_48 {dimension_numbers = #tpu.dot_dimension_numbers<[1], [0], [0], [1], [0, 0, 1, 1], [], []>} : vector<16x32xf32>, vector<32x96xf32>, vector<16x96xf32> -> vector<16x96xf32>
    %133 = vector.broadcast %124 : vector<1x96xf32> to vector<16x96xf32>
    %134 = arith.addf %132, %133 : vector<16x96xf32>
    %135 = vector.extract_strided_slice %134 {offsets = [0, 0], sizes = [16, 24], strides = [1, 1]} : vector<16x96xf32> to vector<16x24xf32>
    %136 = vector.extract_strided_slice %134 {offsets = [0, 24], sizes = [16, 24], strides = [1, 1]} : vector<16x96xf32> to vector<16x24xf32>
    %137 = vector.extract_strided_slice %134 {offsets = [0, 48], sizes = [16, 24], strides = [1, 1]} : vector<16x96xf32> to vector<16x24xf32>
    %138 = vector.extract_strided_slice %134 {offsets = [0, 72], sizes = [16, 24], strides = [1, 1]} : vector<16x96xf32> to vector<16x24xf32>
    %139 = vector.shape_cast %135 : vector<16x24xf32> to vector<1x16x24xf32>
    %140 = vector.shape_cast %136 : vector<16x24xf32> to vector<1x16x24xf32>
    %141 = vector.shape_cast %137 : vector<16x24xf32> to vector<1x16x24xf32>
    %142 = vector.shape_cast %138 : vector<16x24xf32> to vector<1x16x24xf32>
    %143 = tpu.concatenate %139, %140, %141, %142 in 0 : vector<1x16x24xf32>, vector<1x16x24xf32>, vector<1x16x24xf32>, vector<1x16x24xf32> -> vector<4x16x24xf32>
    %144 = vector.shape_cast %143 : vector<4x16x24xf32> to vector<8x8x24xf32>
    %145 = vector.extract_strided_slice %144 {offsets = [0, 0, 0], sizes = [8, 8, 8], strides = [1, 1, 1]} : vector<8x8x24xf32> to vector<8x8x8xf32>
    %146 = vector.extract_strided_slice %144 {offsets = [0, 0, 8], sizes = [8, 8, 8], strides = [1, 1, 1]} : vector<8x8x24xf32> to vector<8x8x8xf32>
    %147 = vector.extract_strided_slice %144 {offsets = [0, 0, 16], sizes = [8, 8, 8], strides = [1, 1, 1]} : vector<8x8x24xf32> to vector<8x8x8xf32>
    "tpu.trace_start"() <{level = 10 : i32, message = "bqd,bkd->bqk"}> : () -> ()
    %cst_49 = arith.constant dense<0.000000e+00> : vector<8x8x8xf32>
    %148 = tpu.matmul %145, %146, %cst_49 {dimension_numbers = #tpu.dot_dimension_numbers<[2], [2], [1], [1], [0, 0, 0, 1, 1, 1], [0], [0]>} : vector<8x8x8xf32>, vector<8x8x8xf32>, vector<8x8x8xf32> -> vector<8x8x8xf32>
    "tpu.trace_stop"() : () -> ()
    %cst_50 = arith.constant dense<0xFF800000> : vector<8x8xf32>
    %149 = vector.multi_reduction <maximumf>, %148, %cst_50 [2] : vector<8x8x8xf32> to vector<8x8xf32>
    %150 = vector.shape_cast %149 : vector<8x8xf32> to vector<8x8x1xf32>
    %151 = vector.broadcast %150 : vector<8x8x1xf32> to vector<8x8x8xf32>
    %152 = arith.subf %148, %151 : vector<8x8x8xf32>
    %153 = math.exp %152 : vector<8x8x8xf32>
    %cst_51 = arith.constant dense<0.000000e+00> : vector<8x8xf32>
    %154 = vector.multi_reduction <add>, %153, %cst_51 [2] : vector<8x8x8xf32> to vector<8x8xf32>
    %155 = vector.shape_cast %154 : vector<8x8xf32> to vector<8x8x1xf32>
    %156 = tpu.reciprocal %155 {approx = true} : vector<8x8x1xf32> -> vector<8x8x1xf32>
    %157 = vector.broadcast %156 : vector<8x8x1xf32> to vector<8x8x8xf32>
    %158 = arith.mulf %153, %157 : vector<8x8x8xf32>
    "tpu.trace_start"() <{level = 10 : i32, message = "bqk,bkd->bqd"}> : () -> ()
    %cst_52 = arith.constant dense<0.000000e+00> : vector<8x8x8xf32>
    %159 = tpu.matmul %158, %147, %cst_52 {dimension_numbers = #tpu.dot_dimension_numbers<[2], [1], [1], [2], [0, 0, 0, 1, 1, 2], [0], [0]>} : vector<8x8x8xf32>, vector<8x8x8xf32>, vector<8x8x8xf32> -> vector<8x8x8xf32>
    "tpu.trace_stop"() : () -> ()
    %160 = vector.shape_cast %159 : vector<8x8x8xf32> to vector<4x16x8xf32>
    %161 = vector.extract_strided_slice %160 {offsets = [0, 0, 0], sizes = [1, 16, 8], strides = [1, 1, 1]} : vector<4x16x8xf32> to vector<1x16x8xf32>
    %162 = vector.shape_cast %161 : vector<1x16x8xf32> to vector<16x8xf32>
    %163 = vector.extract_strided_slice %160 {offsets = [1, 0, 0], sizes = [1, 16, 8], strides = [1, 1, 1]} : vector<4x16x8xf32> to vector<1x16x8xf32>
    %164 = vector.shape_cast %163 : vector<1x16x8xf32> to vector<16x8xf32>
    %165 = vector.extract_strided_slice %160 {offsets = [2, 0, 0], sizes = [1, 16, 8], strides = [1, 1, 1]} : vector<4x16x8xf32> to vector<1x16x8xf32>
    %166 = vector.shape_cast %165 : vector<1x16x8xf32> to vector<16x8xf32>
    %167 = vector.extract_strided_slice %160 {offsets = [3, 0, 0], sizes = [1, 16, 8], strides = [1, 1, 1]} : vector<4x16x8xf32> to vector<1x16x8xf32>
    %168 = vector.shape_cast %167 : vector<1x16x8xf32> to vector<16x8xf32>
    %169 = tpu.concatenate %162, %164, %166, %168 in 1 : vector<16x8xf32>, vector<16x8xf32>, vector<16x8xf32>, vector<16x8xf32> -> vector<16x32xf32>
    %cst_53 = arith.constant dense<0.000000e+00> : vector<16x32xf32>
    %170 = tpu.matmul %169, %117, %cst_53 {dimension_numbers = #tpu.dot_dimension_numbers<[1], [0], [0], [1], [0, 0, 1, 1], [], []>} : vector<16x32xf32>, vector<32x32xf32>, vector<16x32xf32> -> vector<16x32xf32>
    %171 = vector.broadcast %125 : vector<1x32xf32> to vector<16x32xf32>
    %172 = arith.addf %170, %171 : vector<16x32xf32>
    %173 = arith.addf %113, %172 : vector<16x32xf32>
    %cst_54 = arith.constant dense<0.000000e+00> : vector<16xf32>
    %174 = vector.multi_reduction <add>, %173, %cst_54 [1] : vector<16x32xf32> to vector<16xf32>
    %175 = vector.shape_cast %174 : vector<16xf32> to vector<16x1xf32>
    %cst_55 = arith.constant 3.200000e+01 : f32
    %176 = vector.broadcast %cst_55 : f32 to vector<16x1xf32>
    %177 = arith.divf %175, %176 : vector<16x1xf32>
    %178 = vector.broadcast %177 : vector<16x1xf32> to vector<16x32xf32>
    %179 = arith.subf %173, %178 : vector<16x32xf32>
    %180 = arith.mulf %179, %179 : vector<16x32xf32>
    %cst_56 = arith.constant dense<0.000000e+00> : vector<16xf32>
    %181 = vector.multi_reduction <add>, %180, %cst_56 [1] : vector<16x32xf32> to vector<16xf32>
    %182 = vector.shape_cast %181 : vector<16xf32> to vector<16x1xf32>
    %cst_57 = arith.constant 3.200000e+01 : f32
    %183 = vector.broadcast %cst_57 : f32 to vector<16x1xf32>
    %184 = arith.divf %182, %183 : vector<16x1xf32>
    %185 = vector.broadcast %177 : vector<16x1xf32> to vector<16x32xf32>
    %186 = arith.subf %173, %185 : vector<16x32xf32>
    %cst_58 = arith.constant 9.99999974E-6 : f32
    %187 = vector.broadcast %cst_58 : f32 to vector<16x1xf32>
    %188 = arith.addf %184, %187 : vector<16x1xf32>
    %189 = math.rsqrt %188 : vector<16x1xf32>
    %190 = vector.broadcast %189 : vector<16x1xf32> to vector<16x32xf32>
    %191 = arith.mulf %186, %190 : vector<16x32xf32>
    %192 = vector.broadcast %128 : vector<1x32xf32> to vector<16x32xf32>
    %193 = arith.mulf %191, %192 : vector<16x32xf32>
    %194 = vector.broadcast %129 : vector<1x32xf32> to vector<16x32xf32>
    %195 = arith.addf %193, %194 : vector<16x32xf32>
    %cst_59 = arith.constant dense<0.000000e+00> : vector<16x64xf32>
    %196 = tpu.matmul %195, %119, %cst_59 {dimension_numbers = #tpu.dot_dimension_numbers<[1], [0], [0], [1], [0, 0, 1, 1], [], []>} : vector<16x32xf32>, vector<32x64xf32>, vector<16x64xf32> -> vector<16x64xf32>
    %197 = vector.broadcast %126 : vector<1x64xf32> to vector<16x64xf32>
    %198 = arith.addf %196, %197 : vector<16x64xf32>
    %cst_60 = arith.constant 0.000000e+00 : f32
    %199 = vector.broadcast %cst_60 : f32 to vector<16x64xf32>
    %200 = arith.maximumf %198, %199 : vector<16x64xf32>
    %cst_61 = arith.constant dense<0.000000e+00> : vector<16x32xf32>
    %201 = tpu.matmul %200, %121, %cst_61 {dimension_numbers = #tpu.dot_dimension_numbers<[1], [0], [0], [1], [0, 0, 1, 1], [], []>} : vector<16x64xf32>, vector<64x32xf32>, vector<16x32xf32> -> vector<16x32xf32>
    %202 = vector.broadcast %127 : vector<1x32xf32> to vector<16x32xf32>
    %203 = arith.addf %201, %202 : vector<16x32xf32>
    %204 = arith.addf %195, %203 : vector<16x32xf32>
    %cst_62 = arith.constant dense<0.000000e+00> : vector<16xf32>
    %205 = vector.multi_reduction <add>, %204, %cst_62 [1] : vector<16x32xf32> to vector<16xf32>
    %206 = vector.shape_cast %205 : vector<16xf32> to vector<16x1xf32>
    %cst_63 = arith.constant 3.200000e+01 : f32
    %207 = vector.broadcast %cst_63 : f32 to vector<16x1xf32>
    %208 = arith.divf %206, %207 : vector<16x1xf32>
    %209 = vector.broadcast %208 : vector<16x1xf32> to vector<16x32xf32>
    %210 = arith.subf %204, %209 : vector<16x32xf32>
    %211 = arith.mulf %210, %210 : vector<16x32xf32>
    %cst_64 = arith.constant dense<0.000000e+00> : vector<16xf32>
    %212 = vector.multi_reduction <add>, %211, %cst_64 [1] : vector<16x32xf32> to vector<16xf32>
    %213 = vector.shape_cast %212 : vector<16xf32> to vector<16x1xf32>
    %cst_65 = arith.constant 3.200000e+01 : f32
    %214 = vector.broadcast %cst_65 : f32 to vector<16x1xf32>
    %215 = arith.divf %213, %214 : vector<16x1xf32>
    %216 = vector.broadcast %208 : vector<16x1xf32> to vector<16x32xf32>
    %217 = arith.subf %204, %216 : vector<16x32xf32>
    %cst_66 = arith.constant 9.99999974E-6 : f32
    %218 = vector.broadcast %cst_66 : f32 to vector<16x1xf32>
    %219 = arith.addf %215, %218 : vector<16x1xf32>
    %220 = math.rsqrt %219 : vector<16x1xf32>
    %221 = vector.broadcast %220 : vector<16x1xf32> to vector<16x32xf32>
    %222 = arith.mulf %217, %221 : vector<16x32xf32>
    %223 = vector.broadcast %130 : vector<1x32xf32> to vector<16x32xf32>
    %224 = arith.mulf %222, %223 : vector<16x32xf32>
    %225 = vector.broadcast %131 : vector<1x32xf32> to vector<16x32xf32>
    %226 = arith.addf %224, %225 : vector<16x32xf32>
    %c0_67 = arith.constant 0 : index
    %c0_68 = arith.constant 0 : index
    %227 = vector.load %arg6[%c0_67, %c0_68] : memref<16x32xf32, #tpu.memory_space<vmem>>, vector<16x32xf32>
    tpu.vector_store %arg6[%c0_67, %c0_68], %226 {strides = array<i32>} : memref<16x32xf32, #tpu.memory_space<vmem>>, vector<16x32xf32>,
    return
  }
}

</mosaic_0001>

<bundles_post_ra>
// kernel: tpu_custom_call.1
= control target key start
LH: loop header
LB: loop body
LE: loop exit
PB: predicated region body
PF: predicated region fallthrough
CT: control target
= control target key end

     0   :  { %11 = vsyncpa [#allocation3], 0  ;;  %s4962_s0 = inlined_call_operand.hbm [shape: f32[16,32], index: 0, kind: input, shape index: {}]   ;;  %s4963_s1 = inlined_call_operand.vmem [shape: f32[2,32,96], index: 1, kind: input, shape index: {}]   ;;  %s4964_s2 = inlined_call_operand.vmem [shape: f32[2,32,32], index: 2, kind: input, shape index: {}]   ;;  %s4965_s3 = inlined_call_operand.vmem [shape: f32[2,32,64], index: 3, kind: input, shape index: {}]   ;;  %s4966_s4 = inlined_call_operand.vmem [shape: f32[2,64,32], index: 4, kind: input, shape index: {}]   ;;  %s4967_s5 = inlined_call_operand.hbm [shape: f32[2,8,96], index: 5, kind: input, shape index: {}]   ;;  %s4968_s6 = inlined_call_operand.hbm [shape: f32[16,32], index: 6, kind: output, shape index: {}]  }
   0x1   :  { %12 = vsyncpa [#allocation6], 0 }
   0x2   :  { %13 = vsyncpa [#allocation4], 0  ;;  %s4295_s21 = smov [#allocation2]  }
   0x3   :  { %s19_s22 = sshll.u32 %s4295_s21, 4  ;;  %s20_s22 = int_to_ptr.vmem [resolvable:$true] %s19_s22 }
   0x4   :  { %s4237_s23 = scalar_lea.vmem %s20_s22, 256  ;;  %p4242_p1 = scmp.lt.s32.totalorder %s20_s22, %s20_s22 }
   0x5   :  { %p4238_p0 = scmp.ne.s32.totalorder %s20_s22, %s4237_s23  ;;  %p4243_p2 = scmp.lt.s32.totalorder %s4237_s23, %s4237_s23 }
   0x7   :  { %p4244_p3 = por %p4243_p2, %p4242_p1 }
   0x9   :  { %p4245_p4 = pnand %p4244_p3, %p4238_p0 }
   0xb   :  { %4248 = shalt.err (!%p4245_p4)
}
   0xc   :  { %s4296_s24 = smov 128   ;;  %s4297_s25 = smov 8  }
   0xd   :  { %25 = dma.hbm_to_vmem [thread:$0]  %s4962_s0, 256, %s20_s22, [#allocation3], %s4296_s24, %s4296_s24, %s4297_s25  }
   0xe   :  { %s4298_s28 = smov [#allocation5]  }
   0xf   :  { %s39_s29 = sshll.u32 %s4298_s28, 4  ;;  %s40_s29 = int_to_ptr.vmem [resolvable:$true] %s39_s29 }
  0x10   :  { %s4257_s30 = scalar_lea.vmem %s40_s29, 256  ;;  %p4262_p6 = scmp.lt.s32.totalorder %s40_s29, %s40_s29 }
  0x11   :  { %p4258_p5 = scmp.ne.s32.totalorder %s40_s29, %s4257_s30  ;;  %p4263_p7 = scmp.lt.s32.totalorder %s4257_s30, %s4257_s30 }
  0x13   :  { %p4264_p8 = por %p4263_p7, %p4262_p6 }
  0x15   :  { %p4265_p9 = pnand %p4264_p8, %p4258_p5 }
  0x17   :  { %4268 = shalt.err (!%p4265_p9)
}
  0x18   :  { %45 = dma.hbm_to_vmem [thread:$0]  %s4967_s5, 256, %s40_s29, [#allocation6], %s4296_s24, %s4296_s24, %s4297_s25  }
  0x19   :  { %4289 = dma.done.wait [#allocation3], 256  }
  0x1a   :  { %4290 = vsyncadd [#allocation3], 4294967040 }
  0x1b   :  { %4291 = dma.done.wait [#allocation6], 256  }
  0x1c   :  { %4292 = vsyncadd [#allocation6], 4294967040  ;;  %vm79_vm0 = vcmask 261120   ;;  %v57_v0 = vld [vmem:[%s4963_s1 + $0x18] sm:$0xff]  ;;  %v56_v1 = vld [vmem:[%s4963_s1 + $0x10] sm:$0xff]  ;;  %v75_v6 = vlaneseq  ;;  %v4299_v12 = vmov 0.0  }
  0x1d   :  { %3871 = vmatprep.subr.mxu1 %v57_v0  ;;  %v4362_v2 = vld [vmem:[#allocation2] sm:$0xff]  ;;  %v55_v3 = vld [vmem:[%s4963_s1 + $0x8] sm:$0xff]  ;;  %v4379_v9 = vld [vmem:[#allocation5] sm:$0xff]  ;;  %3892 = vmatprep.subr.mxu0 %v4299_v12  ;;  %s4300_s15 = smov 80   ;;  %s4301_s16 = smov 104   ;;  %vm4302_vm1 = vmmov 0  }
  0x1e   :  { %3872 = vmatpush3.msra.mxu1 %v57_v0  ;;  %3879 = vmatprep.mubr.msk.f32.mxu1 %vm79_vm0, %v4362_v2  ;;  %v54_v4 = vld [vmem:[%s4963_s1] sm:$0xff]  ;;  %v4372_v5 = vld [vmem:[#allocation2 + $0x8] sm:$0xff]  ;;  %v4376_v7 = vshrl.u32 %v75_v6, 7  ;;  %s4303_s17 = smov 56   ;;  %s4304_s18 = smov 120   ;;  %vm177_vm2 = vcmask 64512  }
  0x1f   :  { %3873 = vmatprep.subr.mxu1 %v56_v1  ;;  %3894 = vmatprep.mubr.msk.f32.mxu0 %vm4302_vm1, %v4299_v12  ;;  %s4305_s19 = smov 112   ;;  %s4306_s30 = smov 16   ;;  %vm1506_vm3 = vcmask 130048   ;;  %vm1509_vm4 = vcmask 195584   ;;  %vm1729_vm5 = vcmask 523264  }
  0x20   :  { %3874 = vmatpush3.msra.mxu1 %v56_v1  ;;  %v77_v8 = vsub.s32 0, %v4376_v7  ;;  %s4307_s7 = smov 24  }
  0x21   :  { %3875 = vmatprep.subr.mxu1 %v55_v3 }
  0x22   :  { %3876 = vmatpush3.msra.mxu1 %v55_v3  ;;  %v78_v11 = vrot.slane %v4379_v9, %v77_v8 }
  0x23   :  { %3877 = vmatprep.subr.mxu1 %v54_v4 }
  0x24   :  { %3878 = vmatpush3.msra.mxu1 %v54_v4 }
  0x25   :  { %3880 = vmatmul.mubr.msk.f32.vlgmr.msra.gmra.mxu1 %vm79_vm0, %v4372_v5  ;;  %3882 = vmatprep.subr.mxu1 %v4299_v12 }
  0x26   :  { %3884 = vmatprep.mubr.msk.f32.mxu1 %vm4302_vm1, %v4299_v12 }
  0xe5   :  { %v3881_v10 = vpop.f32.mrf.mxu1 }
  0xe6   :  { %v4396_v15 = vadd.f32 %v3881_v10, %v78_v11 }
  0xe7   :  { %v152_v13 = vpop.f32.mrf.mxu1 }
  0xe8   :  { %v4386_v14 = vadd.f32 %v152_v13, %v78_v11 }
  0xea   :  { %167 = vrot.lane.b32.xlu1 %v4386_v14, %s4300_s15  ;;  %163 = vrot.lane.b32.xlu0 %v4386_v14, %s4301_s16 }
  0xee   :  { %169 = vrot.lane.b32.xlu1 %v4396_v15, %s4300_s15  ;;  %165 = vrot.lane.b32.xlu0 %v4396_v15, %s4301_s16 }
  0xf2   :  { %173 = vrot.lane.b32.xlu1 %v4396_v15, %s4303_s17  ;;  %171 = vrot.lane.b32.xlu0 %v4386_v14, %s4303_s17 }
  0xf6   :  { %252 = vrot.lane.b32.xlu1 %v4396_v15, %s4304_s18  ;;  %175 = vrot.lane.b32.xlu0 %v4386_v14, %s4304_s18 }
 0x15c   :  { %v4410_v16 = vpop.permute.xlu1 %167  ;;  %v4412_v17 = vpop.permute.xlu0 %163 }
 0x15d   :  { %328 = vrot.lane.b32.xlu0 %v4412_v17, %s4304_s18 }
 0x160   :  { %v4416_v18 = vpop.permute.xlu1 %169  ;;  %v4418_v19 = vpop.permute.xlu0 %165 }
 0x161   :  { %480 = vrot.lane.b32.xlu0 %v4410_v16, %s4304_s18  ;;  %404 = vrot.lane.b32.xlu1 %v4418_v19, %s4304_s18 }
 0x164   :  { %v4424_v20 = vpop.permute.xlu0 %171  ;;  %v4430_v21 = vpop.permute.xlu1 %173 }
 0x165   :  { %556 = vrot.lane.b32.xlu1 %v4416_v18, %s4304_s18  ;;  %632 = vrot.lane.b32.xlu0 %v4424_v20, %s4304_s18 }
 0x168   :  { %v176_v22 = vpop.permute.xlu0 %175  ;;  %v253_v23 = vpop.permute.xlu1 %252 }
 0x169   :  { %708 = vrot.lane.b32.xlu1 %v4430_v21, %s4304_s18  ;;  %3883 = vmatpush3.xpose.msk.msra.mxu1 %vm177_vm2, %v176_v22 }
 0x16a   :  { %3887 = vmatprep.subr.mxu1 %v4299_v12 }
 0x16c   :  { %3885 = vmatmul.mubr.msk.f32.vlgmr.msra.gmra.mxu1 %vm177_vm2, %v4386_v14 }
 0x16d   :  { %3888 = vmatpush3.xpose.msk.msra.mxu1 %vm177_vm2, %v253_v23  ;;  %3889 = vmatprep.mubr.msk.f32.mxu1 %vm4302_vm1, %v4299_v12 }
 0x16e   :  { %3897 = vmatprep.subr.mxu1 %v4299_v12 }
 0x170   :  { %3890 = vmatmul.mubr.msk.f32.vlgmr.msra.gmra.mxu1 %vm177_vm2, %v4396_v15 }
 0x171   :  { %3899 = vmatprep.mubr.msk.f32.mxu1 %vm4302_vm1, %v4299_v12 }
 0x1cf   :  { %v329_v24 = vpop.permute.xlu0 %328 }
 0x1d0   :  { %3893 = vmatpush3.xpose.msk.msra.mxu0 %vm177_vm2, %v329_v24 }
 0x1d1   :  { %3902 = vmatprep.subr.mxu0 %v4299_v12 }
 0x1d3   :  { %v405_v25 = vpop.permute.xlu1 %404  ;;  %3895 = vmatmul.mubr.msk.f32.vlgmr.msra.gmra.mxu0 %vm177_vm2, %v4412_v17  ;;  %v481_v26 = vpop.permute.xlu0 %480 }
 0x1d4   :  { %3898 = vmatpush3.xpose.msk.msra.mxu1 %vm177_vm2, %v405_v25  ;;  %3903 = vmatpush3.xpose.msk.msra.mxu0 %vm177_vm2, %v481_v26 }
 0x1d5   :  { %3904 = vmatprep.mubr.msk.f32.mxu0 %vm4302_vm1, %v4299_v12  ;;  %3907 = vmatprep.subr.mxu1 %v4299_v12 }
 0x1d6   :  { %3912 = vmatprep.subr.mxu0 %v4299_v12 }
 0x1d7   :  { %v557_v27 = vpop.permute.xlu1 %556  ;;  %3900 = vmatmul.mubr.msk.f32.vlgmr.msra.gmra.mxu1 %vm177_vm2, %v4418_v19  ;;  %3905 = vmatmul.mubr.msk.f32.vlgmr.msra.gmra.mxu0 %vm177_vm2, %v4410_v16  ;;  %v633_v28 = vpop.permute.xlu0 %632 }
 0x1d8   :  { %3908 = vmatpush3.xpose.msk.msra.mxu1 %vm177_vm2, %v557_v27  ;;  %3913 = vmatpush3.xpose.msk.msra.mxu0 %vm177_vm2, %v633_v28 }
 0x1d9   :  { %3909 = vmatprep.mubr.msk.f32.mxu1 %vm4302_vm1, %v4299_v12  ;;  %3914 = vmatprep.mubr.msk.f32.mxu0 %vm4302_vm1, %v4299_v12 }
 0x1da   :  { %3917 = vmatprep.subr.mxu1 %v4299_v12  ;;  %3922 = vmatprep.subr.mxu0 %v4299_v12 }
 0x1db   :  { %v709_v29 = vpop.permute.xlu1 %708  ;;  %3910 = vmatmul.mubr.msk.f32.vlgmr.msra.gmra.mxu1 %vm177_vm2, %v4416_v18  ;;  %3915 = vmatmul.mubr.msk.f32.vlgmr.msra.gmra.mxu0 %vm177_vm2, %v4424_v20 }
 0x1dc   :  { %3918 = vmatpush3.xpose.msk.msra.mxu1 %vm177_vm2, %v709_v29  ;;  %3919 = vmatprep.mubr.msk.f32.mxu1 %vm4302_vm1, %v4299_v12 }
 0x1dd   :  { %3927 = vmatprep.subr.mxu1 %v4299_v12  ;;  %3924 = vmatprep.mubr.msk.f32.mxu0 %vm4302_vm1, %v4299_v12 }
 0x1df   :  { %3920 = vmatmul.mubr.msk.f32.vlgmr.msra.gmra.mxu1 %vm177_vm2, %v4430_v21 }
 0x1e0   :  { %3929 = vmatprep.mubr.msk.f32.mxu1 %vm4302_vm1, %v4299_v12 }
 0x22c   :  { %v248_v30 = vpop.f32.mrf.mxu1 }
 0x22d   :  { %v784_v31 = vsel %vm177_vm2, %v248_v30, -inf }
 0x22e   :  { %785 = vmax.xlane.f32.xlu0 %v784_v31  ;;  %v3886_v32 = vpop.f32.mrf.mxu1 }
 0x230   :  { %v324_v33 = vpop.f32.mrf.mxu1 }
 0x231   :  { %v787_v34 = vsel %vm177_vm2, %v324_v33, -inf }
 0x232   :  { %788 = vmax.xlane.f32.xlu1 %v787_v34  ;;  %v3891_v35 = vpop.f32.mrf.mxu1 }
 0x293   :  { %v400_v36 = vpop.f32.mrf.mxu0 }
 0x294   :  { %v790_v37 = vsel %vm177_vm2, %v400_v36, -inf }
 0x295   :  { %791 = vmax.xlane.f32.xlu0 %v790_v37  ;;  %v3896_v38 = vpop.f32.mrf.mxu0 }
 0x297   :  { %v476_v39 = vpop.f32.mrf.mxu1  ;;  %v552_v40 = vpop.f32.mrf.mxu0 }
 0x298   :  { %v793_v41 = vsel %vm177_vm2, %v476_v39, -inf  ;;  %v796_v42 = vsel %vm177_vm2, %v552_v40, -inf }
 0x299   :  { %v3901_v43 = vpop.f32.mrf.mxu1  ;;  %794 = vmax.xlane.f32.xlu0 %v793_v41  ;;  %797 = vmax.xlane.f32.xlu1 %v796_v42  ;;  %v3906_v44 = vpop.f32.mrf.mxu0 }
 0x29b   :  { %v628_v45 = vpop.f32.mrf.mxu1  ;;  %v704_v46 = vpop.f32.mrf.mxu0 }
 0x29c   :  { %v799_v47 = vsel %vm177_vm2, %v628_v45, -inf  ;;  %v802_v48 = vsel %vm177_vm2, %v704_v46, -inf }
 0x29d   :  { %v3911_v49 = vpop.f32.mrf.mxu1  ;;  %800 = vmax.xlane.f32.xlu0 %v799_v47  ;;  %803 = vmax.xlane.f32.xlu1 %v802_v48  ;;  %v3916_v50 = vpop.f32.mrf.mxu0 }
 0x29f   :  { %v780_v51 = vpop.f32.mrf.mxu1 }
 0x2a0   :  { %v805_v52 = vsel %vm177_vm2, %v780_v51, -inf }
 0x2a1   :  { %v3921_v53 = vpop.f32.mrf.mxu1  ;;  %806 = vmax.xlane.f32.xlu0 %v805_v52 }
 0x2ae   :  { %872 = vrot.lane.b32.xlu1 %v4386_v14, %s4305_s19 }
 0x2b2   :  { %1024 = vrot.lane.b32.xlu1 %v4412_v17, %s4305_s19 }
 0x2b6   :  { %1100 = vrot.lane.b32.xlu1 %v4418_v19, %s4305_s19 }
 0x2b7   :  { %948 = vrot.lane.b32.xlu0 %v4396_v15, %s4305_s19  ;;  %v786_v56 = vpop.xlane.xlu0 %785 }
 0x2b8   :  { %v808_v57 = vsub.f32 %v248_v30, %v786_v56 }
 0x2ba   :  { %1252 = vrot.lane.b32.xlu1 %v4416_v18, %s4305_s19  ;;  %v816_v59 = vmul.f32 1.442695, %v808_v57 }
 0x2bb   :  { %1176 = vrot.lane.b32.xlu0 %v4410_v16, %s4305_s19  ;;  %v789_v54 = vpop.xlane.xlu1 %788 }
 0x2bc   :  { %v809_v55 = vsub.f32 %v324_v33, %v789_v54 }
 0x2be   :  { %v818_v58 = vmul.f32 1.442695, %v809_v55 }
 0x2c0   :  { %4149 = vpow2.f32 %v818_v58 }
 0x2c1   :  { %4151 = vpow2.f32 %v816_v59 }
 0x2cd   :  { %v4502_v60 = vpop.eup %4149 }
 0x2ce   :  { %v835_v61 = vsel %vm177_vm2, %v4502_v60, 0.0  ;;  %v4506_v62 = vpop.eup %4151 }
 0x2cf   :  { %v832_v63 = vsel %vm177_vm2, %v4506_v62, 0.0 }
 0x2da   :  { %836 = vadd.xlane.f32.xlu0 %v835_v61 }
 0x2de   :  { %833 = vadd.xlane.f32.xlu1 %v832_v63 }
 0x31e   :  { %v792_v0 = vpop.xlane.xlu0 %791 }
 0x31f   :  { %v810_v1 = vsub.f32 %v400_v36, %v792_v0 }
 0x321   :  { %v820_v3 = vmul.f32 1.442695, %v810_v1 }
 0x322   :  { %v798_v4 = vpop.xlane.xlu1 %797  ;;  %v795_v6 = vpop.xlane.xlu0 %794 }
 0x323   :  { %4153 = vpow2.f32 %v820_v3  ;;  %v812_v10 = vsub.f32 %v552_v40, %v798_v4  ;;  %v811_v11 = vsub.f32 %v476_v39, %v795_v6 }
 0x325   :  { %v824_v13 = vmul.f32 1.442695, %v812_v10  ;;  %v822_v14 = vmul.f32 1.442695, %v811_v11 }
 0x326   :  { %v804_v15 = vpop.xlane.xlu1 %803  ;;  %v801_v16 = vpop.xlane.xlu0 %800 }
 0x327   :  { %4155 = vpow2.f32 %v824_v13  ;;  %v814_v17 = vsub.f32 %v704_v46, %v804_v15  ;;  %v813_v18 = vsub.f32 %v628_v45, %v801_v16  ;;  %v60_v15 = vld [vmem:[%s4964_s2 + $0x10] sm:$0xff]  ;;  %v59_v16 = vld [vmem:[%s4964_s2 + $0x8] sm:$0xff] }
 0x328   :  { %4157 = vpow2.f32 %v822_v14  ;;  %v61_v14 = vld [vmem:[%s4964_s2 + $0x18] sm:$0xff] }
 0x329   :  { %v828_v19 = vmul.f32 1.442695, %v814_v17  ;;  %v826_v22 = vmul.f32 1.442695, %v813_v18  ;;  %v58_v18 = vld [vmem:[%s4964_s2] sm:$0xff] }
 0x32a   :  { %v873_v23 = vpop.permute.xlu1 %872  ;;  %v807_v24 = vpop.xlane.xlu0 %806 }
 0x32b   :  { %4159 = vpow2.f32 %v828_v19  ;;  %v815_v25 = vsub.f32 %v780_v51, %v807_v24  ;;  %3923 = vmatpush3.msra.mxu0 %v873_v23 }
 0x32c   :  { %4161 = vpow2.f32 %v826_v22  ;;  %3932 = vmatprep.subr.mxu0 %v4299_v12 }
 0x32d   :  { %v830_v26 = vmul.f32 1.442695, %v815_v25 }
 0x32e   :  { %v949_v27 = vpop.permute.xlu0 %948  ;;  %v1025_v40 = vpop.permute.xlu1 %1024 }
 0x32f   :  { %4163 = vpow2.f32 %v830_v26  ;;  %3928 = vmatpush3.msra.mxu1 %v949_v27 }
 0x330   :  { %v4154_v28 = vpop.eup %4153  ;;  %3937 = vmatprep.subr.mxu1 %v4299_v12 }
 0x331   :  { %v838_v29 = vsel %vm177_vm2, %v4154_v28, 0.0 }
 0x332   :  { %839 = vadd.xlane.f32.xlu1 %v838_v29  ;;  %v1101_v41 = vpop.permute.xlu1 %1100  ;;  %v1177_v42 = vpop.permute.xlu0 %1176 }
 0x334   :  { %v4156_v30 = vpop.eup %4155 }
 0x335   :  { %v4158_v31 = vpop.eup %4157  ;;  %v844_v32 = vsel %vm177_vm2, %v4156_v30, 0.0 }
 0x336   :  { %845 = vadd.xlane.f32.xlu1 %v844_v32  ;;  %v841_v33 = vsel %vm177_vm2, %v4158_v31, 0.0  ;;  %v1253_v43 = vpop.permute.xlu1 %1252 }
 0x337   :  { %842 = vadd.xlane.f32.xlu0 %v841_v33 }
 0x338   :  { %v4160_v34 = vpop.eup %4159 }
 0x339   :  { %v4515_v35 = vpop.eup %4161  ;;  %v850_v36 = vsel %vm177_vm2, %v4160_v34, 0.0 }
 0x33a   :  { %851 = vadd.xlane.f32.xlu1 %v850_v36  ;;  %v847_v37 = vsel %vm177_vm2, %v4515_v35, 0.0 }
 0x33b   :  { %848 = vadd.xlane.f32.xlu0 %v847_v37 }
 0x33c   :  { %v4520_v38 = vpop.eup %4163 }
 0x33d   :  { %v853_v39 = vsel %vm177_vm2, %v4520_v38, 0.0 }
 0x33f   :  { %854 = vadd.xlane.f32.xlu0 %v853_v39 }
 0x34b   :  { %1404 = vrot.lane.b32.xlu1 %v4430_v21, %s4305_s19 }
 0x355   :  { %1328 = vrot.lane.b32.xlu0 %v4424_v20, %s4305_s19 }
 0x363   :  { %v837_v44 = vpop.xlane.xlu0 %836 }
 0x364   :  { %4165 = vrcp.f32 %v837_v44  ;;  %v1514_v44 = vsub.s32 1, %v4376_v7 }
 0x367   :  { %v834_v45 = vpop.xlane.xlu1 %833 }
 0x368   :  { %4167 = vrcp.f32 %v834_v45  ;;  %v1515_v45 = vrot.slane %v4379_v9, %v1514_v44 }
 0x371   :  { %v4166_v46 = vpop.eup %4165 }
 0x372   :  { %v865_v47 = vmul.f32 %v4166_v46, %v4502_v60 }
 0x374   :  { %3930 = vmatmul.mubr.msk.f32.vlgmr.msra.gmra.mxu1 %vm177_vm2, %v865_v47 }
 0x375   :  { %v4168_v48 = vpop.eup %4167  ;;  %3938 = vmatpush3.msra.mxu1 %v1101_v41  ;;  %3939 = vmatprep.mubr.msk.f32.mxu1 %vm4302_vm1, %v4299_v12 }
 0x376   :  { %v864_v20 = vmul.f32 %v4168_v48, %v4506_v62  ;;  %3947 = vmatprep.subr.mxu1 %v4299_v12 }
 0x378   :  { %3925 = vmatmul.mubr.msk.f32.vlgmr.msra.gmra.mxu0 %vm177_vm2, %v864_v20 }
 0x379   :  { %3933 = vmatpush3.msra.mxu0 %v1025_v40  ;;  %3934 = vmatprep.mubr.msk.f32.mxu0 %vm4302_vm1, %v4299_v12 }
 0x37a   :  { %3942 = vmatprep.subr.mxu0 %v4299_v12 }
 0x3bb   :  { %v840_v21 = vpop.xlane.xlu1 %839 }
 0x3bc   :  { %4169 = vrcp.f32 %v840_v21 }
 0x3bf   :  { %v846_v49 = vpop.xlane.xlu1 %845 }
 0x3c0   :  { %4171 = vrcp.f32 %v846_v49  ;;  %v843_v50 = vpop.xlane.xlu0 %842 }
 0x3c1   :  { %4173 = vrcp.f32 %v843_v50 }
 0x3c3   :  { %v852_v51 = vpop.xlane.xlu1 %851 }
 0x3c4   :  { %4175 = vrcp.f32 %v852_v51  ;;  %v849_v52 = vpop.xlane.xlu0 %848 }
 0x3c5   :  { %4177 = vrcp.f32 %v849_v52 }
 0x3c7   :  { %v1405_v1 = vpop.permute.xlu1 %1404 }
 0x3c8   :  { %v855_v53 = vpop.xlane.xlu0 %854 }
 0x3c9   :  { %v4170_v54 = vpop.eup %4169  ;;  %4179 = vrcp.f32 %v855_v53 }
 0x3ca   :  { %v866_v55 = vmul.f32 %v4170_v54, %v4154_v28 }
 0x3cc   :  { %3935 = vmatmul.mubr.msk.f32.vlgmr.msra.gmra.mxu0 %vm177_vm2, %v866_v55  ;;  %v1329_v60 = vpop.permute.xlu0 %1328 }
 0x3cd   :  { %v4172_v56 = vpop.eup %4171  ;;  %3943 = vmatpush3.msra.mxu0 %v1177_v42  ;;  %3944 = vmatprep.mubr.msk.f32.mxu0 %vm4302_vm1, %v4299_v12 }
 0x3ce   :  { %v4174_v57 = vpop.eup %4173  ;;  %3952 = vmatprep.subr.mxu0 %v4299_v12  ;;  %v868_v58 = vmul.f32 %v4172_v56, %v4156_v30 }
 0x3cf   :  { %v867_v59 = vmul.f32 %v4174_v57, %v4158_v31 }
 0x3d0   :  { %3945 = vmatmul.mubr.msk.f32.vlgmr.msra.gmra.mxu0 %vm177_vm2, %v868_v58 }
 0x3d1   :  { %v4176_v61 = vpop.eup %4175  ;;  %3940 = vmatmul.mubr.msk.f32.vlgmr.msra.gmra.mxu1 %vm177_vm2, %v867_v59  ;;  %3953 = vmatpush3.msra.mxu0 %v1329_v60 }
 0x3d2   :  { %v4178_v62 = vpop.eup %4177  ;;  %3948 = vmatpush3.msra.mxu1 %v1253_v43  ;;  %3949 = vmatprep.mubr.msk.f32.mxu1 %vm4302_vm1, %v4299_v12  ;;  %v870_v63 = vmul.f32 %v4176_v61, %v4160_v34  ;;  %v64_v61 = vld [vmem:[%s4965_s3 + $0x10] sm:$0xff] }
 0x3d3   :  { %3954 = vmatprep.mubr.msk.f32.mxu0 %vm4302_vm1, %v4299_v12  ;;  %3957 = vmatprep.subr.mxu1 %v4299_v12  ;;  %v869_v0 = vmul.f32 %v4178_v62, %v4515_v35  ;;  %v63_v62 = vld [vmem:[%s4965_s3 + $0x8] sm:$0xff] }
 0x3d4   :  { %3955 = vmatmul.mubr.msk.f32.vlgmr.msra.gmra.mxu0 %vm177_vm2, %v870_v63  ;;  %3962 = vmatprep.subr.mxu0 %v61_v14  ;;  %v62_v63 = vld [vmem:[%s4965_s3] sm:$0xff] }
 0x3d5   :  { %3950 = vmatmul.mubr.msk.f32.vlgmr.msra.gmra.mxu1 %vm177_vm2, %v869_v0  ;;  %3963 = vmatpush3.msra.mxu0 %v61_v14  ;;  %v73_v0 = vld [vmem:[%s4966_s4 + $0x38] sm:$0xff] }
 0x3d6   :  { %v4180_v3 = vpop.eup %4179  ;;  %3958 = vmatpush3.msra.mxu1 %v1405_v1  ;;  %3959 = vmatprep.mubr.msk.f32.mxu1 %vm4302_vm1, %v4299_v12  ;;  %v72_v1 = vld [vmem:[%s4966_s4 + $0x30] sm:$0xff] }
 0x3d7   :  { %v871_v4 = vmul.f32 %v4180_v3, %v4520_v38  ;;  %3964 = vmatprep.subr.mxu0 %v60_v15  ;;  %v71_v3 = vld [vmem:[%s4966_s4 + $0x28] sm:$0xff] }
 0x3d8   :  { %3965 = vmatpush3.msra.mxu0 %v60_v15 }
 0x3d9   :  { %3960 = vmatmul.mubr.msk.f32.vlgmr.msra.gmra.mxu1 %vm177_vm2, %v871_v4  ;;  %3966 = vmatprep.subr.mxu0 %v59_v16  ;;  %v70_v4 = vld [vmem:[%s4966_s4 + $0x20] sm:$0xff] }
 0x3da   :  { %3967 = vmatpush3.msra.mxu0 %v59_v16  ;;  %v1628_v16 = vsub.s32 4, %v4376_v7 }
 0x3db   :  { %3968 = vmatprep.subr.mxu0 %v58_v18 }
 0x3dc   :  { %3969 = vmatpush3.msra.mxu0 %v58_v18  ;;  %v1629_v18 = vrot.slane %v4379_v9, %v1628_v16 }
 0x3dd   :  { %3984 = vmatprep.subr.mxu0 %v73_v0 }
 0x434   :  { %v1020_v6 = vpop.f32.mrf.mxu1 }
 0x436   :  { %v3931_v10 = vpop.f32.mrf.mxu1 }
 0x438   :  { %v944_v11 = vpop.f32.mrf.mxu0 }
 0x43a   :  { %v3926_v13 = vpop.f32.mrf.mxu0 }
 0x48c   :  { %v1096_v17 = vpop.f32.mrf.mxu0 }
 0x48d   :  { %1482 = vrot.lane.b32.xlu0 %v1096_v17, %s4297_s25  ;;  %v1634_v17 = vsub.s32 5, %v4376_v7 }
 0x48e   :  { %v3936_v19 = vpop.f32.mrf.mxu0 }
 0x490   :  { %v1248_v22 = vpop.f32.mrf.mxu0 }
 0x491   :  { %v1172_v23 = vpop.f32.mrf.mxu1  ;;  %1490 = vrot.lane.b32.xlu0 %v1248_v22, %s4306_s30 }
 0x492   :  { %1484 = vrot.lane.b32.xlu1 %v1172_v23, %s4297_s25  ;;  %v3946_v24 = vpop.f32.mrf.mxu0  ;;  %v1635_v23 = vrot.slane %v4379_v9, %v1634_v17 }
 0x493   :  { %v3941_v25 = vpop.f32.mrf.mxu1 }
 0x494   :  { %v1400_v26 = vpop.f32.mrf.mxu0 }
 0x495   :  { %v1324_v27 = vpop.f32.mrf.mxu1  ;;  %1498 = vrot.lane.b32.xlu0 %v1400_v26, %s4307_s7 }
 0x496   :  { %1492 = vrot.lane.b32.xlu1 %v1324_v27, %s4306_s30  ;;  %v3956_v28 = vpop.f32.mrf.mxu0 }
 0x497   :  { %v3951_v29 = vpop.f32.mrf.mxu1 }
 0x499   :  { %v1476_v30 = vpop.f32.mrf.mxu1 }
 0x49a   :  { %1500 = vrot.lane.b32.xlu1 %v1476_v30, %s4307_s7  ;;  %v69_v30 = vld [vmem:[%s4966_s4 + $0x18] sm:$0xff] }
 0x49b   :  { %v3961_v31 = vpop.f32.mrf.mxu1 }
 0x49c   :  { %v68_v31 = vld [vmem:[%s4966_s4 + $0x10] sm:$0xff] }
 0x4ff   :  { %v1483_v32 = vpop.permute.xlu0 %1482 }
 0x500   :  { %v1504_v35 = vsel %vm177_vm2, %v944_v11, %v1483_v32  ;;  %v67_v32 = vld [vmem:[%s4966_s4 + $0x8] sm:$0xff] }
 0x503   :  { %v1491_v33 = vpop.permute.xlu0 %1490 }
 0x504   :  { %v1485_v34 = vpop.permute.xlu1 %1484  ;;  %v1507_v36 = vsel %vm1506_vm3, %v1504_v35, %v1491_v33  ;;  %v66_v33 = vld [vmem:[%s4966_s4] sm:$0xff] }
 0x505   :  { %v1505_v40 = vsel %vm177_vm2, %v1020_v6, %v1485_v34  ;;  %v1640_v34 = vsub.s32 2, %v4376_v7 }
 0x507   :  { %v1499_v37 = vpop.permute.xlu0 %1498  ;;  %v1641_v35 = vrot.slane %v4379_v9, %v1640_v34 }
 0x508   :  { %v1493_v38 = vpop.permute.xlu1 %1492  ;;  %v1510_v39 = vsel %vm1509_vm4, %v1507_v36, %v1499_v37 }
 0x509   :  { %3970 = vmatprep.mubr.msk.f32.mxu0 %vm79_vm0, %v1510_v39  ;;  %v1508_v41 = vsel %vm1506_vm3, %v1505_v40, %v1493_v38 }
 0x50c   :  { %v1501_v42 = vpop.permute.xlu1 %1500 }
 0x50d   :  { %v1511_v43 = vsel %vm1509_vm4, %v1508_v41, %v1501_v42  ;;  %v1727_v42 = vsub.s32 3, %v4376_v7 }
 0x50e   :  { %3971 = vmatmul.mubr.msk.f32.vlgmr.msra.gmra.mxu0 %vm79_vm0, %v1511_v43 }
 0x50f   :  { %3985 = vmatpush3.msra.mxu0 %v73_v0  ;;  %v1728_v43 = vrot.slane %v4379_v9, %v1727_v42 }
 0x510   :  { %3986 = vmatprep.subr.mxu0 %v72_v1 }
 0x511   :  { %3987 = vmatpush3.msra.mxu0 %v72_v1 }
 0x512   :  { %3988 = vmatprep.subr.mxu0 %v71_v3 }
 0x513   :  { %3989 = vmatpush3.msra.mxu0 %v71_v3 }
 0x514   :  { %3990 = vmatprep.subr.mxu0 %v70_v4 }
 0x515   :  { %3991 = vmatpush3.msra.mxu0 %v70_v4 }
 0x516   :  { %3992 = vmatprep.subr.mxu0 %v69_v30 }
 0x517   :  { %3993 = vmatpush3.msra.mxu0 %v69_v30 }
 0x518   :  { %3994 = vmatprep.subr.mxu0 %v68_v31 }
 0x519   :  { %3995 = vmatpush3.msra.mxu0 %v68_v31 }
 0x51a   :  { %3996 = vmatprep.subr.mxu0 %v67_v32 }
 0x51b   :  { %3997 = vmatpush3.msra.mxu0 %v67_v32 }
 0x51c   :  { %3998 = vmatprep.subr.mxu0 %v66_v33 }
 0x51d   :  { %3999 = vmatpush3.msra.mxu0 %v66_v33 }
 0x51e   :  { %4024 = vmatprep.subr.mxu0 %v4299_v12 }
 0x5ce   :  { %v3972_v46 = vpop.f32.mrf.mxu0 }
 0x5cf   :  { %v1594_v47 = vadd.f32 %v3972_v46, %v1515_v45 }
 0x5d0   :  { %v1588_v48 = vpop.f32.mrf.mxu0 }
 0x5d1   :  { %v1589_v20 = vadd.f32 %v1588_v48, %v1515_v45  ;;  %v1598_v21 = vadd.f32 %v1594_v47, %v4372_v5 }
 0x5d3   :  { %v1602_v49 = vsel %vm79_vm0, %v1598_v21, 0.0  ;;  %v1597_v50 = vadd.f32 %v1589_v20, %v4362_v2  ;;  %v65_v2 = vld [vmem:[%s4965_s3 + $0x18] sm:$0xff] }
 0x5d4   :  { %1603 = vadd.xlane.f32.xlu1 %v1602_v49  ;;  %3973 = vmatprep.subr.mxu1 %v65_v2 }
 0x5d5   :  { %v1599_v51 = vsel %vm79_vm0, %v1597_v50, 0.0  ;;  %3974 = vmatpush3.msra.mxu1 %v65_v2  ;;  %v3701_v2 = vld [vmem:[%s4963_s1 + $0x30] sm:$0xff] }
 0x5d6   :  { %1600 = vadd.xlane.f32.xlu0 %v1599_v51  ;;  %3975 = vmatprep.subr.mxu1 %v64_v61 }
 0x5d7   :  { %3976 = vmatpush3.msra.mxu1 %v64_v61  ;;  %v3700_v61 = vld [vmem:[%s4963_s1 + $0x28] sm:$0xff] }
 0x5d8   :  { %3977 = vmatprep.subr.mxu1 %v63_v62 }
 0x5d9   :  { %3978 = vmatpush3.msra.mxu1 %v63_v62  ;;  %v3699_v62 = vld [vmem:[%s4963_s1 + $0x20] sm:$0xff] }
 0x5da   :  { %3979 = vmatprep.subr.mxu1 %v62_v63 }
 0x5db   :  { %3980 = vmatpush3.msra.mxu1 %v62_v63 }
 0x65d   :  { %v1604_v52 = vpop.xlane.xlu1 %1603 }
 0x65e   :  { %v1607_v53 = vmul.f32 0.03125, %v1604_v52 }
 0x65f   :  { %v1601_v54 = vpop.xlane.xlu0 %1600 }
 0x660   :  { %v1606_v55 = vmul.f32 0.03125, %v1601_v54  ;;  %v1609_v56 = vsub.f32 %v1598_v21, %v1607_v53 }
 0x662   :  { %v1608_v57 = vsub.f32 %v1597_v50, %v1606_v55  ;;  %v1611_v60 = vmul.f32 %v1609_v56, %v1609_v56 }
 0x664   :  { %v1610_v58 = vmul.f32 %v1608_v57, %v1608_v57  ;;  %v1615_v5 = vsel %vm79_vm0, %v1611_v60, 0.0 }
 0x666   :  { %v1612_v59 = vsel %vm79_vm0, %v1610_v58, 0.0 }
 0x667   :  { %1613 = vadd.xlane.f32.xlu0 %v1612_v59 }
 0x66b   :  { %1616 = vadd.xlane.f32.xlu0 %v1615_v5  ;;  %v3702_v5 = vld [vmem:[%s4963_s1 + $0x38] sm:$0xff] }
 0x66c   :  { %4003 = vmatprep.subr.mxu1 %v3702_v5 }
 0x6f0   :  { %v1614_v6 = vpop.xlane.xlu0 %1613 }
 0x6f1   :  { %v1618_v10 = vmul.f32 0.03125, %v1614_v6 }
 0x6f3   :  { %v1620_v11 = vadd.f32 1e-05, %v1618_v10  ;;  %v1841_v10 = vsub.s32 6, %v4376_v7 }
 0x6f4   :  { %v1617_v13 = vpop.xlane.xlu0 %1616 }
 0x6f5   :  { %4181 = vrsqrt.f32 %v1620_v11  ;;  %v1619_v14 = vmul.f32 0.03125, %v1617_v13  ;;  %v1842_v13 = vrot.slane %v4379_v9, %v1841_v10 }
 0x6f7   :  { %v1621_v15 = vadd.f32 1e-05, %v1619_v14  ;;  %v1847_v14 = vsub.s32 7, %v4376_v7 }
 0x6f9   :  { %4183 = vrsqrt.f32 %v1621_v15 }
 0x702   :  { %v4182_v19 = vpop.eup %4181 }
 0x703   :  { %v1624_v22 = vmul.f32 %v4182_v19, %v1608_v57 }
 0x705   :  { %v1630_v24 = vmul.f32 %v1629_v18, %v1624_v22 }
 0x706   :  { %v4184_v25 = vpop.eup %4183 }
 0x707   :  { %v1625_v26 = vmul.f32 %v4184_v25, %v1609_v56  ;;  %v1636_v27 = vadd.f32 %v1635_v23, %v1630_v24 }
 0x709   :  { %v1631_v28 = vmul.f32 %v1629_v18, %v1625_v26  ;;  %3981 = vmatprep.mubr.msk.f32.mxu1 %vm79_vm0, %v1636_v27 }
 0x70b   :  { %v1637_v29 = vadd.f32 %v1635_v23, %v1631_v28  ;;  %v1848_v23 = vrot.slane %v4379_v9, %v1847_v14 }
 0x70d   :  { %3982 = vmatmul.mubr.msk.f32.vlgmr.msra.gmra.mxu1 %vm79_vm0, %v1637_v29 }
 0x70e   :  { %4004 = vmatpush3.msra.mxu1 %v3702_v5 }
 0x70f   :  { %4005 = vmatprep.subr.mxu1 %v3701_v2 }
 0x710   :  { %4006 = vmatpush3.msra.mxu1 %v3701_v2 }
 0x711   :  { %4007 = vmatprep.subr.mxu1 %v3700_v61 }
 0x712   :  { %4008 = vmatpush3.msra.mxu1 %v3700_v61 }
 0x713   :  { %4009 = vmatprep.subr.mxu1 %v3699_v62 }
 0x714   :  { %4010 = vmatpush3.msra.mxu1 %v3699_v62 }
 0x715   :  { %4014 = vmatprep.subr.mxu1 %v4299_v12 }
 0x7cd   :  { %v3983_v36 = vpop.f32.mrf.mxu1 }
 0x7ce   :  { %v1720_v37 = vadd.f32 %v3983_v36, %v1641_v35 }
 0x7cf   :  { %v1714_v38 = vpop.f32.mrf.mxu1 }
 0x7d0   :  { %v1715_v39 = vadd.f32 %v1714_v38, %v1641_v35  ;;  %v1724_v41 = vmax.f32 %v1720_v37, 0.0 }
 0x7d2   :  { %v1723_v40 = vmax.f32 %v1715_v39, 0.0 }
 0x7d4   :  { %4000 = vmatprep.mubr.msk.f32.mxu0 %vm1729_vm5, %v1723_v40 }
 0x7d5   :  { %4001 = vmatmul.mubr.msk.f32.vlgmr.msra.gmra.mxu0 %vm1729_vm5, %v1724_v41 }
 0x7d6   :  { %4026 = vmatprep.mubr.msk.f32.mxu0 %vm4302_vm1, %v4299_v12 }
 0x895   :  { %v4002_v45 = vpop.f32.mrf.mxu0 }
 0x896   :  { %v1808_v46 = vadd.f32 %v4002_v45, %v1728_v43 }
 0x897   :  { %v1802_v47 = vpop.f32.mrf.mxu0 }
 0x898   :  { %v1803_v48 = vadd.f32 %v1802_v47, %v1728_v43  ;;  %v1812_v20 = vadd.f32 %v1808_v46, %v1637_v29 }
 0x89a   :  { %v1816_v21 = vsel %vm79_vm0, %v1812_v20, 0.0  ;;  %v1811_v49 = vadd.f32 %v1803_v48, %v1636_v27  ;;  %v4686_v27 = vld [vmem:[#allocation5 + $0x8] sm:$0xff] }
 0x89b   :  { %1817 = vadd.xlane.f32.xlu0 %v1816_v21  ;;  %v1880_v9 = vrot.slane %v4686_v27, %v77_v8 }
 0x89c   :  { %v1813_v50 = vsel %vm79_vm0, %v1811_v49, 0.0 }
 0x89d   :  { %1814 = vadd.xlane.f32.xlu1 %v1813_v50 }
 0x924   :  { %v1818_v51 = vpop.xlane.xlu0 %1817 }
 0x925   :  { %v1820_v52 = vmul.f32 0.03125, %v1818_v51 }
 0x926   :  { %v1815_v53 = vpop.xlane.xlu1 %1814 }
 0x927   :  { %v1822_v54 = vsub.f32 %v1812_v20, %v1820_v52  ;;  %v1819_v55 = vmul.f32 0.03125, %v1815_v53 }
 0x929   :  { %v1821_v56 = vsub.f32 %v1811_v49, %v1819_v55  ;;  %v1824_v57 = vmul.f32 %v1822_v54, %v1822_v54 }
 0x92b   :  { %v1828_v58 = vsel %vm79_vm0, %v1824_v57, 0.0  ;;  %v1823_v59 = vmul.f32 %v1821_v56, %v1821_v56 }
 0x92c   :  { %1829 = vadd.xlane.f32.xlu0 %v1828_v58 }
 0x92d   :  { %v1825_v60 = vsel %vm79_vm0, %v1823_v59, 0.0 }
 0x92e   :  { %1826 = vadd.xlane.f32.xlu1 %v1825_v60 }
 0x9b5   :  { %v1830_v63 = vpop.xlane.xlu0 %1829 }
 0x9b6   :  { %v1832_v0 = vmul.f32 0.03125, %v1830_v63 }
 0x9b7   :  { %v1827_v1 = vpop.xlane.xlu1 %1826 }
 0x9b8   :  { %v1834_v3 = vadd.f32 1e-05, %v1832_v0  ;;  %v1831_v4 = vmul.f32 0.03125, %v1827_v1 }
 0x9ba   :  { %4185 = vrsqrt.f32 %v1834_v3  ;;  %v1833_v6 = vadd.f32 1e-05, %v1831_v4 }
 0x9bc   :  { %4187 = vrsqrt.f32 %v1833_v6 }
 0x9c7   :  { %v4186_v11 = vpop.eup %4185 }
 0x9c8   :  { %v1838_v15 = vmul.f32 %v4186_v11, %v1822_v54 }
 0x9c9   :  { %v4188_v18 = vpop.eup %4187 }
 0x9ca   :  { %v1837_v19 = vmul.f32 %v4188_v18, %v1821_v56  ;;  %v1844_v22 = vmul.f32 %v1842_v13, %v1838_v15 }
 0x9cc   :  { %v1843_v24 = vmul.f32 %v1842_v13, %v1837_v19  ;;  %v4678_v26 = vadd.f32 %v1848_v23, %v1844_v22 }
 0x9ce   :  { %v4676_v25 = vadd.f32 %v1848_v23, %v1843_v24 }
 0x9d0   :  { %4011 = vmatprep.mubr.msk.f32.mxu1 %vm79_vm0, %v4676_v25 }
 0x9d1   :  { %4012 = vmatmul.mubr.msk.f32.vlgmr.msra.gmra.mxu1 %vm79_vm0, %v4678_v26 }
 0x9d2   :  { %4016 = vmatprep.mubr.msk.f32.mxu1 %vm4302_vm1, %v4299_v12 }
 0xa91   :  { %v4013_v28 = vpop.f32.mrf.mxu1 }
 0xa92   :  { %v4691_v29 = vadd.f32 %v4013_v28, %v1880_v9 }
 0xa93   :  { %v1953_v30 = vpop.f32.mrf.mxu1 }
 0xa94   :  { %v4693_v31 = vadd.f32 %v1953_v30, %v1880_v9  ;;  %1966 = vrot.lane.b32.xlu0 %v4691_v29, %s4301_s16 }
 0xa96   :  { %1964 = vrot.lane.b32.xlu1 %v4693_v31, %s4301_s16 }
 0xa98   :  { %1972 = vrot.lane.b32.xlu0 %v4693_v31, %s4303_s17 }
 0xa9a   :  { %1968 = vrot.lane.b32.xlu1 %v4693_v31, %s4300_s15 }
 0xa9c   :  { %1976 = vrot.lane.b32.xlu0 %v4693_v31, %s4304_s18 }
 0xa9e   :  { %1970 = vrot.lane.b32.xlu1 %v4691_v29, %s4300_s15 }
 0xaa2   :  { %1974 = vrot.lane.b32.xlu1 %v4691_v29, %s4303_s17 }
 0xaa6   :  { %2052 = vrot.lane.b32.xlu1 %v4691_v29, %s4304_s18 }
 0xb06   :  { %v4711_v8 = vpop.permute.xlu0 %1966 }
 0xb07   :  { %2204 = vrot.lane.b32.xlu1 %v4711_v8, %s4304_s18 }
 0xb08   :  { %v4715_v32 = vpop.permute.xlu1 %1964 }
 0xb09   :  { %2128 = vrot.lane.b32.xlu0 %v4715_v32, %s4304_s18 }
 0xb0a   :  { %v4719_v33 = vpop.permute.xlu0 %1972 }
 0xb0c   :  { %v4721_v35 = vpop.permute.xlu1 %1968 }
 0xb0d   :  { %2280 = vrot.lane.b32.xlu0 %v4721_v35, %s4304_s18 }
 0xb0e   :  { %v1977_v36 = vpop.permute.xlu0 %1976 }
 0xb0f   :  { %4015 = vmatpush3.xpose.msk.msra.mxu1 %vm177_vm2, %v1977_v36 }
 0xb10   :  { %v4726_v37 = vpop.permute.xlu1 %1970  ;;  %4019 = vmatprep.subr.mxu1 %v4299_v12 }
 0xb11   :  { %2432 = vrot.lane.b32.xlu0 %v4719_v33, %s4304_s18  ;;  %2356 = vrot.lane.b32.xlu1 %v4726_v37, %s4304_s18 }
 0xb12   :  { %4017 = vmatmul.mubr.msk.f32.vlgmr.msra.gmra.mxu1 %vm177_vm2, %v4693_v31 }
 0xb13   :  { %4021 = vmatprep.mubr.msk.f32.mxu1 %vm4302_vm1, %v4299_v12 }
 0xb14   :  { %v4737_v38 = vpop.permute.xlu1 %1974 }
 0xb15   :  { %2508 = vrot.lane.b32.xlu1 %v4737_v38, %s4304_s18 }
 0xb18   :  { %v2053_v39 = vpop.permute.xlu1 %2052 }
 0xb19   :  { %4020 = vmatpush3.xpose.msk.msra.mxu1 %vm177_vm2, %v2053_v39 }
 0xb1a   :  { %4029 = vmatprep.subr.mxu1 %v4299_v12 }
 0xb1c   :  { %4022 = vmatmul.mubr.msk.f32.vlgmr.msra.gmra.mxu1 %vm177_vm2, %v4691_v29 }
 0xb1d   :  { %4031 = vmatprep.mubr.msk.f32.mxu1 %vm4302_vm1, %v4299_v12 }
 0xb79   :  { %v2205_v40 = vpop.permute.xlu1 %2204 }
 0xb7a   :  { %4030 = vmatpush3.xpose.msk.msra.mxu1 %vm177_vm2, %v2205_v40 }
 0xb7b   :  { %v2129_v41 = vpop.permute.xlu0 %2128  ;;  %4039 = vmatprep.subr.mxu1 %v4299_v12 }
 0xb7c   :  { %4025 = vmatpush3.xpose.msk.msra.mxu0 %vm177_vm2, %v2129_v41 }
 0xb7d   :  { %4032 = vmatmul.mubr.msk.f32.vlgmr.msra.gmra.mxu1 %vm177_vm2, %v4711_v8  ;;  %4034 = vmatprep.subr.mxu0 %v4299_v12 }
 0xb7e   :  { %4041 = vmatprep.mubr.msk.f32.mxu1 %vm4302_vm1, %v4299_v12 }
 0xb7f   :  { %4027 = vmatmul.mubr.msk.f32.vlgmr.msra.gmra.mxu0 %vm177_vm2, %v4715_v32  ;;  %v2281_v43 = vpop.permute.xlu0 %2280 }
 0xb80   :  { %4035 = vmatpush3.xpose.msk.msra.mxu0 %vm177_vm2, %v2281_v43  ;;  %4036 = vmatprep.mubr.msk.f32.mxu0 %vm4302_vm1, %v4299_v12 }
 0xb81   :  { %4044 = vmatprep.subr.mxu0 %v4299_v12 }
 0xb83   :  { %4037 = vmatmul.mubr.msk.f32.vlgmr.msra.gmra.mxu0 %vm177_vm2, %v4721_v35  ;;  %v2433_v45 = vpop.permute.xlu0 %2432  ;;  %v2357_v46 = vpop.permute.xlu1 %2356 }
 0xb84   :  { %4040 = vmatpush3.xpose.msk.msra.mxu1 %vm177_vm2, %v2357_v46  ;;  %4045 = vmatpush3.xpose.msk.msra.mxu0 %vm177_vm2, %v2433_v45 }
 0xb85   :  { %4046 = vmatprep.mubr.msk.f32.mxu0 %vm4302_vm1, %v4299_v12  ;;  %4049 = vmatprep.subr.mxu1 %v4299_v12 }
 0xb86   :  { %4054 = vmatprep.subr.mxu0 %v4299_v12 }
 0xb87   :  { %4042 = vmatmul.mubr.msk.f32.vlgmr.msra.gmra.mxu1 %vm177_vm2, %v4726_v37  ;;  %4047 = vmatmul.mubr.msk.f32.vlgmr.msra.gmra.mxu0 %vm177_vm2, %v4719_v33  ;;  %v2509_v47 = vpop.permute.xlu1 %2508 }
 0xb88   :  { %4050 = vmatpush3.xpose.msk.msra.mxu1 %vm177_vm2, %v2509_v47  ;;  %4051 = vmatprep.mubr.msk.f32.mxu1 %vm4302_vm1, %v4299_v12 }
 0xb89   :  { %4059 = vmatprep.subr.mxu1 %v4299_v12  ;;  %4056 = vmatprep.mubr.msk.f32.mxu0 %vm4302_vm1, %v4299_v12 }
 0xb8b   :  { %4052 = vmatmul.mubr.msk.f32.vlgmr.msra.gmra.mxu1 %vm177_vm2, %v4737_v38 }
 0xb8c   :  { %4061 = vmatprep.mubr.msk.f32.mxu1 %vm4302_vm1, %v4299_v12 }
 0xbd2   :  { %v2048_v48 = vpop.f32.mrf.mxu1 }
 0xbd3   :  { %v2584_v20 = vsel %vm177_vm2, %v2048_v48, -inf }
 0xbd4   :  { %v4018_v21 = vpop.f32.mrf.mxu1  ;;  %2585 = vmax.xlane.f32.xlu0 %v2584_v20 }
 0xbdc   :  { %v2124_v49 = vpop.f32.mrf.mxu1 }
 0xbdd   :  { %v2587_v50 = vsel %vm177_vm2, %v2124_v49, -inf }
 0xbde   :  { %2588 = vmax.xlane.f32.xlu1 %v2587_v50  ;;  %v4023_v51 = vpop.f32.mrf.mxu1 }
 0xc3d   :  { %v2276_v52 = vpop.f32.mrf.mxu1 }
 0xc3e   :  { %v2593_v59 = vsel %vm177_vm2, %v2276_v52, -inf }
 0xc3f   :  { %v2200_v53 = vpop.f32.mrf.mxu0  ;;  %v4033_v54 = vpop.f32.mrf.mxu1 }
 0xc40   :  { %v2590_v55 = vsel %vm177_vm2, %v2200_v53, -inf }
 0xc41   :  { %v4028_v56 = vpop.f32.mrf.mxu0  ;;  %2591 = vmax.xlane.f32.xlu0 %v2590_v55 }
 0xc43   :  { %v2352_v57 = vpop.f32.mrf.mxu0 }
 0xc44   :  { %v2596_v58 = vsel %vm177_vm2, %v2352_v57, -inf }
 0xc45   :  { %v4038_v60 = vpop.f32.mrf.mxu0  ;;  %2597 = vmax.xlane.f32.xlu1 %v2596_v58  ;;  %2594 = vmax.xlane.f32.xlu0 %v2593_v59 }
 0xc47   :  { %v2428_v5 = vpop.f32.mrf.mxu1  ;;  %v2504_v2 = vpop.f32.mrf.mxu0 }
 0xc48   :  { %v2602_v61 = vsel %vm177_vm2, %v2504_v2, -inf  ;;  %v2599_v62 = vsel %vm177_vm2, %v2428_v5, -inf }
 0xc49   :  { %v4048_v63 = vpop.f32.mrf.mxu0  ;;  %2603 = vmax.xlane.f32.xlu1 %v2602_v61  ;;  %2600 = vmax.xlane.f32.xlu0 %v2599_v62  ;;  %v4043_v0 = vpop.f32.mrf.mxu1 }
 0xc4b   :  { %v2580_v1 = vpop.f32.mrf.mxu1 }
 0xc4c   :  { %v2605_v3 = vsel %vm177_vm2, %v2580_v1, -inf }
 0xc4d   :  { %2606 = vmax.xlane.f32.xlu0 %v2605_v3  ;;  %v4053_v4 = vpop.f32.mrf.mxu1 }
 0xc5a   :  { %2672 = vrot.lane.b32.xlu1 %v4693_v31, %s4305_s19 }
 0xc5d   :  { %v2586_v13 = vpop.xlane.xlu0 %2585 }
 0xc5e   :  { %2824 = vrot.lane.b32.xlu1 %v4715_v32, %s4305_s19  ;;  %v2608_v15 = vsub.f32 %v2048_v48, %v2586_v13 }
 0xc60   :  { %v2616_v19 = vmul.f32 1.442695, %v2608_v15 }
 0xc62   :  { %2900 = vrot.lane.b32.xlu1 %v4711_v8, %s4305_s19 }
 0xc63   :  { %2748 = vrot.lane.b32.xlu0 %v4691_v29, %s4305_s19 }
 0xc66   :  { %3052 = vrot.lane.b32.xlu1 %v4726_v37, %s4305_s19 }
 0xc67   :  { %2976 = vrot.lane.b32.xlu0 %v4721_v35, %s4305_s19  ;;  %v2589_v6 = vpop.xlane.xlu1 %2588 }
 0xc68   :  { %v2609_v11 = vsub.f32 %v2124_v49, %v2589_v6 }
 0xc6a   :  { %v2618_v18 = vmul.f32 1.442695, %v2609_v11 }
 0xc6c   :  { %4189 = vpow2.f32 %v2618_v18 }
 0xc6d   :  { %4191 = vpow2.f32 %v2616_v19 }
 0xc79   :  { %v4803_v22 = vpop.eup %4189 }
 0xc7a   :  { %v2635_v23 = vsel %vm177_vm2, %v4803_v22, 0.0  ;;  %v4807_v24 = vpop.eup %4191 }
 0xc7b   :  { %v2632_v9 = vsel %vm177_vm2, %v4807_v24, 0.0 }
 0xc86   :  { %2636 = vadd.xlane.f32.xlu0 %v2635_v23 }
 0xc8a   :  { %2633 = vadd.xlane.f32.xlu1 %v2632_v9 }
 0xcca   :  { %v2592_v28 = vpop.xlane.xlu0 %2591 }
 0xccb   :  { %v2610_v29 = vsub.f32 %v2200_v53, %v2592_v28 }
 0xccd   :  { %v2620_v30 = vmul.f32 1.442695, %v2610_v29 }
 0xcce   :  { %v2595_v31 = vpop.xlane.xlu0 %2594  ;;  %v2598_v8 = vpop.xlane.xlu1 %2597 }
 0xccf   :  { %4193 = vpow2.f32 %v2620_v30  ;;  %v2611_v32 = vsub.f32 %v2276_v52, %v2595_v31  ;;  %v2612_v35 = vsub.f32 %v2352_v57, %v2598_v8 }
 0xcd1   :  { %v2622_v36 = vmul.f32 1.442695, %v2611_v32  ;;  %v2624_v37 = vmul.f32 1.442695, %v2612_v35 }
 0xcd2   :  { %v2601_v39 = vpop.xlane.xlu0 %2600  ;;  %v2604_v40 = vpop.xlane.xlu1 %2603 }
 0xcd3   :  { %4195 = vpow2.f32 %v2622_v36  ;;  %v2613_v41 = vsub.f32 %v2428_v5, %v2601_v39  ;;  %v2614_v43 = vsub.f32 %v2504_v2, %v2604_v40 }
 0xcd4   :  { %4197 = vpow2.f32 %v2624_v37 }
 0xcd5   :  { %v2626_v45 = vmul.f32 1.442695, %v2613_v41  ;;  %v2628_v46 = vmul.f32 1.442695, %v2614_v43 }
 0xcd6   :  { %v2607_v47 = vpop.xlane.xlu0 %2606  ;;  %v2673_v48 = vpop.permute.xlu1 %2672 }
 0xcd7   :  { %4199 = vpow2.f32 %v2626_v45  ;;  %v2615_v20 = vsub.f32 %v2580_v1, %v2607_v47  ;;  %4055 = vmatpush3.msra.mxu0 %v2673_v48  ;;  %v3705_v47 = vld [vmem:[%s4964_s2 + $0x30] sm:$0xff]  ;;  %v3703_v48 = vld [vmem:[%s4964_s2 + $0x20] sm:$0xff] }
 0xcd8   :  { %4201 = vpow2.f32 %v2628_v46  ;;  %4064 = vmatprep.subr.mxu0 %v4299_v12  ;;  %v3706_v46 = vld [vmem:[%s4964_s2 + $0x38] sm:$0xff] }
 0xcd9   :  { %v2630_v21 = vmul.f32 1.442695, %v2615_v20 }
 0xcda   :  { %v2749_v49 = vpop.permute.xlu0 %2748  ;;  %v2825_v2 = vpop.permute.xlu1 %2824 }
 0xcdb   :  { %4203 = vpow2.f32 %v2630_v21  ;;  %4060 = vmatpush3.msra.mxu1 %v2749_v49 }
 0xcdc   :  { %v4194_v50 = vpop.eup %4193  ;;  %4069 = vmatprep.subr.mxu1 %v4299_v12 }
 0xcdd   :  { %v2638_v51 = vsel %vm177_vm2, %v4194_v50, 0.0 }
 0xcde   :  { %2639 = vadd.xlane.f32.xlu1 %v2638_v51  ;;  %v2901_v61 = vpop.permute.xlu1 %2900  ;;  %v2977_v62 = vpop.permute.xlu0 %2976 }
 0xce0   :  { %v4196_v52 = vpop.eup %4195 }
 0xce1   :  { %v4198_v53 = vpop.eup %4197  ;;  %v2641_v54 = vsel %vm177_vm2, %v4196_v52, 0.0 }
 0xce2   :  { %2642 = vadd.xlane.f32.xlu0 %v2641_v54  ;;  %v2644_v55 = vsel %vm177_vm2, %v4198_v53, 0.0  ;;  %v3053_v63 = vpop.permute.xlu1 %3052 }
 0xce3   :  { %2645 = vadd.xlane.f32.xlu1 %v2644_v55 }
 0xce4   :  { %v4200_v56 = vpop.eup %4199 }
 0xce5   :  { %v4816_v57 = vpop.eup %4201  ;;  %v2647_v58 = vsel %vm177_vm2, %v4200_v56, 0.0 }
 0xce6   :  { %2648 = vadd.xlane.f32.xlu0 %v2647_v58  ;;  %v2650_v59 = vsel %vm177_vm2, %v4816_v57, 0.0 }
 0xce7   :  { %2651 = vadd.xlane.f32.xlu1 %v2650_v59 }
 0xce8   :  { %v4821_v60 = vpop.eup %4203 }
 0xce9   :  { %v2653_v5 = vsel %vm177_vm2, %v4821_v60, 0.0 }
 0xcea   :  { %2654 = vadd.xlane.f32.xlu0 %v2653_v5 }
 0xcf8   :  { %3204 = vrot.lane.b32.xlu1 %v4737_v38, %s4305_s19 }
 0xd00   :  { %3128 = vrot.lane.b32.xlu0 %v4719_v33, %s4305_s19 }
 0xd0f   :  { %v2637_v0 = vpop.xlane.xlu0 %2636 }
 0xd10   :  { %4205 = vrcp.f32 %v2637_v0 }
 0xd13   :  { %v2634_v1 = vpop.xlane.xlu1 %2633 }
 0xd14   :  { %4207 = vrcp.f32 %v2634_v1 }
 0xd1d   :  { %v4206_v3 = vpop.eup %4205 }
 0xd1e   :  { %v2665_v4 = vmul.f32 %v4206_v3, %v4803_v22 }
 0xd20   :  { %4062 = vmatmul.mubr.msk.f32.vlgmr.msra.gmra.mxu1 %vm177_vm2, %v2665_v4 }
 0xd21   :  { %v4208_v6 = vpop.eup %4207  ;;  %4070 = vmatpush3.msra.mxu1 %v2901_v61  ;;  %4071 = vmatprep.mubr.msk.f32.mxu1 %vm4302_vm1, %v4299_v12 }
 0xd22   :  { %v2664_v33 = vmul.f32 %v4208_v6, %v4807_v24  ;;  %4079 = vmatprep.subr.mxu1 %v4299_v12 }
 0xd24   :  { %4057 = vmatmul.mubr.msk.f32.vlgmr.msra.gmra.mxu0 %vm177_vm2, %v2664_v33  ;;  %v3313_v33 = vrot.slane %v4686_v27, %v1514_v44 }
 0xd25   :  { %4065 = vmatpush3.msra.mxu0 %v2825_v2  ;;  %4066 = vmatprep.mubr.msk.f32.mxu0 %vm4302_vm1, %v4299_v12 }
 0xd26   :  { %4074 = vmatprep.subr.mxu0 %v4299_v12 }
 0xd67   :  { %v2640_v38 = vpop.xlane.xlu1 %2639 }
 0xd68   :  { %4209 = vrcp.f32 %v2640_v38 }
 0xd6b   :  { %v2643_v11 = vpop.xlane.xlu0 %2642 }
 0xd6c   :  { %4211 = vrcp.f32 %v2643_v11  ;;  %v2646_v13 = vpop.xlane.xlu1 %2645 }
 0xd6d   :  { %4213 = vrcp.f32 %v2646_v13 }
 0xd6f   :  { %v2649_v15 = vpop.xlane.xlu0 %2648 }
 0xd70   :  { %4215 = vrcp.f32 %v2649_v15  ;;  %v2652_v18 = vpop.xlane.xlu1 %2651 }
 0xd71   :  { %4217 = vrcp.f32 %v2652_v18 }
 0xd73   :  { %v2655_v19 = vpop.xlane.xlu0 %2654 }
 0xd74   :  { %4219 = vrcp.f32 %v2655_v19  ;;  %v3205_v36 = vpop.permute.xlu1 %3204 }
 0xd75   :  { %v4210_v22 = vpop.eup %4209 }
 0xd76   :  { %v2666_v23 = vmul.f32 %v4210_v22, %v4194_v50 }
 0xd77   :  { %v3129_v31 = vpop.permute.xlu0 %3128 }
 0xd78   :  { %4067 = vmatmul.mubr.msk.f32.vlgmr.msra.gmra.mxu0 %vm177_vm2, %v2666_v23 }
 0xd79   :  { %v4212_v24 = vpop.eup %4211  ;;  %4075 = vmatpush3.msra.mxu0 %v2977_v62  ;;  %4076 = vmatprep.mubr.msk.f32.mxu0 %vm4302_vm1, %v4299_v12 }
 0xd7a   :  { %v4214_v9 = vpop.eup %4213  ;;  %4084 = vmatprep.subr.mxu0 %v4299_v12  ;;  %v2667_v28 = vmul.f32 %v4212_v24, %v4196_v52 }
 0xd7b   :  { %v2668_v29 = vmul.f32 %v4214_v9, %v4198_v53 }
 0xd7c   :  { %4072 = vmatmul.mubr.msk.f32.vlgmr.msra.gmra.mxu1 %vm177_vm2, %v2667_v28 }
 0xd7d   :  { %v4216_v30 = vpop.eup %4215  ;;  %4077 = vmatmul.mubr.msk.f32.vlgmr.msra.gmra.mxu0 %vm177_vm2, %v2668_v29  ;;  %4080 = vmatpush3.msra.mxu1 %v3053_v63 }
 0xd7e   :  { %v4218_v8 = vpop.eup %4217  ;;  %4085 = vmatpush3.msra.mxu0 %v3129_v31  ;;  %4081 = vmatprep.mubr.msk.f32.mxu1 %vm4302_vm1, %v4299_v12  ;;  %v2669_v32 = vmul.f32 %v4216_v30, %v4200_v56 }
 0xd7f   :  { %4086 = vmatprep.mubr.msk.f32.mxu0 %vm4302_vm1, %v4299_v12  ;;  %4089 = vmatprep.subr.mxu1 %v4299_v12  ;;  %v2670_v35 = vmul.f32 %v4218_v8, %v4816_v57 }
 0xd80   :  { %4082 = vmatmul.mubr.msk.f32.vlgmr.msra.gmra.mxu1 %vm177_vm2, %v2669_v32  ;;  %4094 = vmatprep.subr.mxu0 %v3706_v46 }
 0xd81   :  { %v4220_v37 = vpop.eup %4219  ;;  %4087 = vmatmul.mubr.msk.f32.vlgmr.msra.gmra.mxu0 %vm177_vm2, %v2670_v35  ;;  %4090 = vmatpush3.msra.mxu1 %v3205_v36  ;;  %v3709_v35 = vld [vmem:[%s4965_s3 + $0x30] sm:$0xff]  ;;  %v3708_v36 = vld [vmem:[%s4965_s3 + $0x28] sm:$0xff] }
 0xd82   :  { %4091 = vmatprep.mubr.msk.f32.mxu1 %vm4302_vm1, %v4299_v12  ;;  %v2671_v39 = vmul.f32 %v4220_v37, %v4821_v60  ;;  %4095 = vmatpush3.msra.mxu0 %v3706_v46  ;;  %v3704_v12 = vld [vmem:[%s4964_s2 + $0x28] sm:$0xff]  ;;  %v3707_v37 = vld [vmem:[%s4965_s3 + $0x20] sm:$0xff] }
 0xd83   :  { %4096 = vmatprep.subr.mxu0 %v3705_v47 }
 0xd84   :  { %4092 = vmatmul.mubr.msk.f32.vlgmr.msra.gmra.mxu1 %vm177_vm2, %v2671_v39  ;;  %4097 = vmatpush3.msra.mxu0 %v3705_v47  ;;  %v3718_v39 = vld [vmem:[%s4966_s4 + $0x78] sm:$0xff] }
 0xd85   :  { %4098 = vmatprep.subr.mxu0 %v3704_v12 }
 0xd86   :  { %4099 = vmatpush3.msra.mxu0 %v3704_v12 }
 0xd87   :  { %4100 = vmatprep.subr.mxu0 %v3703_v48 }
 0xd88   :  { %4101 = vmatpush3.msra.mxu0 %v3703_v48 }
 0xd89   :  { %4116 = vmatprep.subr.mxu0 %v3718_v39 }
 0xde0   :  { %v2820_v40 = vpop.f32.mrf.mxu1 }
 0xde2   :  { %v4063_v41 = vpop.f32.mrf.mxu1 }
 0xde3   :  { %v3716_v41 = vld [vmem:[%s4966_s4 + $0x68] sm:$0xff] }
 0xde4   :  { %v2744_v43 = vpop.f32.mrf.mxu0 }
 0xde6   :  { %v4058_v45 = vpop.f32.mrf.mxu0 }
 0xe38   :  { %v2896_v20 = vpop.f32.mrf.mxu0 }
 0xe39   :  { %3282 = vrot.lane.b32.xlu0 %v2896_v20, %s4297_s25 }
 0xe3a   :  { %v4068_v21 = vpop.f32.mrf.mxu0 }
 0xe3b   :  { %v3426_v21 = vrot.slane %v4686_v27, %v1628_v16  ;;  %v3714_v16 = vld [vmem:[%s4966_s4 + $0x58] sm:$0xff] }
 0xe3c   :  { %v2972_v49 = vpop.f32.mrf.mxu1 }
 0xe3d   :  { %v3048_v50 = vpop.f32.mrf.mxu0  ;;  %3284 = vrot.lane.b32.xlu1 %v2972_v49, %s4297_s25 }
 0xe3e   :  { %3290 = vrot.lane.b32.xlu0 %v3048_v50, %s4306_s30  ;;  %v4073_v51 = vpop.f32.mrf.mxu1 }
 0xe3f   :  { %v4078_v52 = vpop.f32.mrf.mxu0  ;;  %v3432_v51 = vrot.slane %v4686_v27, %v1634_v17  ;;  %v3713_v17 = vld [vmem:[%s4966_s4 + $0x50] sm:$0xff] }
 0xe40   :  { %v3124_v53 = vpop.f32.mrf.mxu1 }
 0xe41   :  { %v3200_v54 = vpop.f32.mrf.mxu0  ;;  %3292 = vrot.lane.b32.xlu1 %v3124_v53, %s4306_s30 }
 0xe42   :  { %3298 = vrot.lane.b32.xlu0 %v3200_v54, %s4307_s7  ;;  %v4083_v55 = vpop.f32.mrf.mxu1 }
 0xe43   :  { %v4088_v56 = vpop.f32.mrf.mxu0 }
 0xe44   :  { %v3276_v57 = vpop.f32.mrf.mxu1 }
 0xe45   :  { %3300 = vrot.lane.b32.xlu1 %v3276_v57, %s4307_s7 }
 0xe46   :  { %v4093_v58 = vpop.f32.mrf.mxu1 }
 0xe47   :  { %v3712_v58 = vld [vmem:[%s4966_s4 + $0x48] sm:$0xff] }
 0xeab   :  { %v3283_v59 = vpop.permute.xlu0 %3282 }
 0xeac   :  { %v3304_v2 = vsel %vm177_vm2, %v2744_v43, %v3283_v59  ;;  %v3715_v43 = vld [vmem:[%s4966_s4 + $0x60] sm:$0xff] }
 0xead   :  { %v3711_v59 = vld [vmem:[%s4966_s4 + $0x40] sm:$0xff] }
 0xeaf   :  { %v3285_v60 = vpop.permute.xlu1 %3284 }
 0xeb0   :  { %v3291_v5 = vpop.permute.xlu0 %3290  ;;  %v3305_v1 = vsel %vm177_vm2, %v2820_v40, %v3285_v60  ;;  %v3717_v40 = vld [vmem:[%s4966_s4 + $0x70] sm:$0xff]  ;;  %v3438_v60 = vrot.slane %v4686_v27, %v1640_v34  ;;  %s4308_s4 = smov [#allocation7]  }
 0xeb1   :  { %v3306_v62 = vsel %vm1506_vm3, %v3304_v2, %v3291_v5  ;;  %s3654_s19 = sshll.u32 %s4308_s4, 4  ;;  %s3655_s19 = int_to_ptr.vmem [resolvable:$true] %s3654_s19 }
 0xeb2   :  { %s4269_s28 = scalar_lea.vmem %s3655_s19, 256  ;;  %p4274_p11 = scmp.lt.s32.totalorder %s3655_s19, %s3655_s19 }
 0xeb3   :  { %v3293_v61 = vpop.permute.xlu1 %3292  ;;  %p4270_p10 = scmp.ne.s32.totalorder %s3655_s19, %s4269_s28  ;;  %p4275_p12 = scmp.lt.s32.totalorder %s4269_s28, %s4269_s28 }
 0xeb4   :  { %v3299_v63 = vpop.permute.xlu0 %3298  ;;  %v3307_v3 = vsel %vm1506_vm3, %v3305_v1, %v3293_v61  ;;  %v3525_v1 = vrot.slane %v4686_v27, %v1727_v42 }
 0xeb5   :  { %v3308_v0 = vsel %vm1509_vm4, %v3306_v62, %v3299_v63  ;;  %p4276_p13 = por %p4275_p12, %p4274_p11 }
 0xeb6   :  { %4102 = vmatprep.mubr.msk.f32.mxu0 %vm79_vm0, %v3308_v0 }
 0xeb7   :  { %v3301_v4 = vpop.permute.xlu1 %3300  ;;  %p4277_p0 = pnand %p4276_p13, %p4270_p10 }
 0xeb8   :  { %v3309_v6 = vsel %vm1509_vm4, %v3307_v3, %v3301_v4 }
 0xeb9   :  { %4103 = vmatmul.mubr.msk.f32.vlgmr.msra.gmra.mxu0 %vm79_vm0, %v3309_v6 }
 0xeba   :  { %4117 = vmatpush3.msra.mxu0 %v3718_v39 }
 0xebb   :  { %4118 = vmatprep.subr.mxu0 %v3717_v40 }
 0xebc   :  { %4119 = vmatpush3.msra.mxu0 %v3717_v40 }
 0xebd   :  { %4120 = vmatprep.subr.mxu0 %v3716_v41 }
 0xebe   :  { %4121 = vmatpush3.msra.mxu0 %v3716_v41 }
 0xebf   :  { %4122 = vmatprep.subr.mxu0 %v3715_v43 }
 0xec0   :  { %4123 = vmatpush3.msra.mxu0 %v3715_v43 }
 0xec1   :  { %4124 = vmatprep.subr.mxu0 %v3714_v16 }
 0xec2   :  { %4125 = vmatpush3.msra.mxu0 %v3714_v16 }
 0xec3   :  { %4126 = vmatprep.subr.mxu0 %v3713_v17 }
 0xec4   :  { %4127 = vmatpush3.msra.mxu0 %v3713_v17 }
 0xec5   :  { %4128 = vmatprep.subr.mxu0 %v3712_v58 }
 0xec6   :  { %4129 = vmatpush3.msra.mxu0 %v3712_v58 }
 0xec7   :  { %4130 = vmatprep.subr.mxu0 %v3711_v59 }
 0xec8   :  { %4131 = vmatpush3.msra.mxu0 %v3711_v59 }
 0xf79   :  { %v4104_v38 = vpop.f32.mrf.mxu0 }
 0xf7a   :  { %v3392_v11 = vadd.f32 %v4104_v38, %v3313_v33 }
 0xf7b   :  { %v3386_v13 = vpop.f32.mrf.mxu0 }
 0xf7c   :  { %v3387_v15 = vadd.f32 %v3386_v13, %v3313_v33  ;;  %v3396_v18 = vadd.f32 %v3392_v11, %v4678_v26 }
 0xf7e   :  { %v3400_v19 = vsel %vm79_vm0, %v3396_v18, 0.0  ;;  %v3395_v22 = vadd.f32 %v3387_v15, %v4676_v25  ;;  %v3710_v25 = vld [vmem:[%s4965_s3 + $0x38] sm:$0xff] }
 0xf7f   :  { %3401 = vadd.xlane.f32.xlu1 %v3400_v19  ;;  %4105 = vmatprep.subr.mxu1 %v3710_v25 }
 0xf80   :  { %v3397_v23 = vsel %vm79_vm0, %v3395_v22, 0.0  ;;  %4106 = vmatpush3.msra.mxu1 %v3710_v25  ;;  %v3638_v25 = vrot.slane %v4686_v27, %v1841_v10 }
 0xf81   :  { %3398 = vadd.xlane.f32.xlu0 %v3397_v23  ;;  %4107 = vmatprep.subr.mxu1 %v3709_v35 }
 0xf82   :  { %4108 = vmatpush3.msra.mxu1 %v3709_v35 }
 0xf83   :  { %4109 = vmatprep.subr.mxu1 %v3708_v36 }
 0xf84   :  { %4110 = vmatpush3.msra.mxu1 %v3708_v36 }
 0xf85   :  { %4111 = vmatprep.subr.mxu1 %v3707_v37 }
 0xf86   :  { %4112 = vmatpush3.msra.mxu1 %v3707_v37  ;;  %v3644_v37 = vrot.slane %v4686_v27, %v1847_v14 }
0x1008   :  { %v3402_v24 = vpop.xlane.xlu1 %3401 }
0x1009   :  { %v3404_v9 = vmul.f32 0.03125, %v3402_v24 }
0x100a   :  { %v3399_v28 = vpop.xlane.xlu0 %3398 }
0x100b   :  { %v3403_v29 = vmul.f32 0.03125, %v3399_v28  ;;  %v3406_v30 = vsub.f32 %v3396_v18, %v3404_v9 }
0x100d   :  { %v3405_v44 = vsub.f32 %v3395_v22, %v3403_v29  ;;  %v3408_v32 = vmul.f32 %v3406_v30, %v3406_v30 }
0x100f   :  { %v3407_v31 = vmul.f32 %v3405_v44, %v3405_v44  ;;  %v3412_v26 = vsel %vm79_vm0, %v3408_v32, 0.0 }
0x1011   :  { %v3409_v8 = vsel %vm79_vm0, %v3407_v31, 0.0 }
0x1012   :  { %3410 = vadd.xlane.f32.xlu0 %v3409_v8 }
0x1016   :  { %3413 = vadd.xlane.f32.xlu0 %v3412_v26 }
0x109b   :  { %v3411_v45 = vpop.xlane.xlu0 %3410 }
0x109c   :  { %v3415_v46 = vmul.f32 0.03125, %v3411_v45 }
0x109e   :  { %v3417_v47 = vadd.f32 1e-05, %v3415_v46 }
0x109f   :  { %v3414_v12 = vpop.xlane.xlu0 %3413 }
0x10a0   :  { %4221 = vrsqrt.f32 %v3417_v47  ;;  %v3416_v48 = vmul.f32 0.03125, %v3414_v12 }
0x10a2   :  { %v3418_v20 = vadd.f32 1e-05, %v3416_v48 }
0x10a4   :  { %4223 = vrsqrt.f32 %v3418_v20 }
0x10ad   :  { %v4222_v49 = vpop.eup %4221 }
0x10ae   :  { %v3421_v50 = vmul.f32 %v4222_v49, %v3405_v44 }
0x10b0   :  { %v3427_v52 = vmul.f32 %v3426_v21, %v3421_v50 }
0x10b1   :  { %v4224_v53 = vpop.eup %4223 }
0x10b2   :  { %v3422_v54 = vmul.f32 %v4224_v53, %v3406_v30  ;;  %v3433_v55 = vadd.f32 %v3432_v51, %v3427_v52 }
0x10b4   :  { %v3428_v56 = vmul.f32 %v3426_v21, %v3422_v54  ;;  %4113 = vmatprep.mubr.msk.f32.mxu1 %vm79_vm0, %v3433_v55 }
0x10b6   :  { %v3434_v57 = vadd.f32 %v3432_v51, %v3428_v56 }
0x10b8   :  { %4114 = vmatmul.mubr.msk.f32.vlgmr.msra.gmra.mxu1 %vm79_vm0, %v3434_v57 }
0x1178   :  { %v4115_v5 = vpop.f32.mrf.mxu1 }
0x1179   :  { %v3517_v2 = vadd.f32 %v4115_v5, %v3438_v60 }
0x117a   :  { %v3511_v61 = vpop.f32.mrf.mxu1 }
0x117b   :  { %v3512_v62 = vadd.f32 %v3511_v61, %v3438_v60  ;;  %v3521_v0 = vmax.f32 %v3517_v2, 0.0 }
0x117d   :  { %v3520_v63 = vmax.f32 %v3512_v62, 0.0 }
0x117f   :  { %4132 = vmatprep.mubr.msk.f32.mxu0 %vm1729_vm5, %v3520_v63 }
0x1180   :  { %4133 = vmatmul.mubr.msk.f32.vlgmr.msra.gmra.mxu0 %vm1729_vm5, %v3521_v0 }
0x1240   :  { %v4134_v3 = vpop.f32.mrf.mxu0 }
0x1241   :  { %v3604_v4 = vadd.f32 %v4134_v3, %v3525_v1 }
0x1242   :  { %v3598_v6 = vpop.f32.mrf.mxu0 }
0x1243   :  { %v3608_v33 = vadd.f32 %v3604_v4, %v3434_v57  ;;  %v3599_v38 = vadd.f32 %v3598_v6, %v3525_v1 }
0x1245   :  { %v3607_v34 = vadd.f32 %v3599_v38, %v3433_v55  ;;  %v3612_v11 = vsel %vm79_vm0, %v3608_v33, 0.0 }
0x1246   :  { %3613 = vadd.xlane.f32.xlu0 %v3612_v11 }
0x1247   :  { %v3609_v13 = vsel %vm79_vm0, %v3607_v34, 0.0 }
0x1248   :  { %3610 = vadd.xlane.f32.xlu1 %v3609_v13 }
0x12cf   :  { %v3614_v15 = vpop.xlane.xlu0 %3613 }
0x12d0   :  { %v3616_v18 = vmul.f32 0.03125, %v3614_v15 }
0x12d1   :  { %v3611_v19 = vpop.xlane.xlu1 %3610 }
0x12d2   :  { %v3618_v22 = vsub.f32 %v3608_v33, %v3616_v18  ;;  %v3615_v23 = vmul.f32 0.03125, %v3611_v19 }
0x12d4   :  { %v3617_v24 = vsub.f32 %v3607_v34, %v3615_v23  ;;  %v3620_v9 = vmul.f32 %v3618_v22, %v3618_v22 }
0x12d6   :  { %v3624_v42 = vsel %vm79_vm0, %v3620_v9, 0.0  ;;  %v3619_v28 = vmul.f32 %v3617_v24, %v3617_v24 }
0x12d7   :  { %3625 = vadd.xlane.f32.xlu0 %v3624_v42 }
0x12d8   :  { %v3621_v29 = vsel %vm79_vm0, %v3619_v28, 0.0 }
0x12d9   :  { %3622 = vadd.xlane.f32.xlu1 %v3621_v29 }
0x1360   :  { %v3626_v30 = vpop.xlane.xlu0 %3625 }
0x1361   :  { %v3628_v44 = vmul.f32 0.03125, %v3626_v30 }
0x1362   :  { %v3623_v31 = vpop.xlane.xlu1 %3622 }
0x1363   :  { %v3630_v8 = vadd.f32 1e-05, %v3628_v44  ;;  %v3627_v32 = vmul.f32 0.03125, %v3623_v31 }
0x1365   :  { %4225 = vrsqrt.f32 %v3630_v8  ;;  %v3629_v26 = vadd.f32 1e-05, %v3627_v32 }
0x1367   :  { %4227 = vrsqrt.f32 %v3629_v26 }
0x1372   :  { %v4226_v35 = vpop.eup %4225 }
0x1373   :  { %v3634_v36 = vmul.f32 %v4226_v35, %v3618_v22 }
0x1374   :  { %v4228_v39 = vpop.eup %4227 }
0x1375   :  { %v3633_v40 = vmul.f32 %v4228_v39, %v3617_v24  ;;  %v3640_v41 = vmul.f32 %v3638_v25, %v3634_v36 }
0x1377   :  { %v3639_v43 = vmul.f32 %v3638_v25, %v3633_v40  ;;  %v3646_v45 = vadd.f32 %v3644_v37, %v3640_v41 }
0x1379   :  { %v3645_v46 = vadd.f32 %v3644_v37, %v3639_v43  ;;  %3648 = vst.msk [vmem:[#allocation7 + $0x8] sm:$0xff] %vm79_vm0, %v3646_v45 }
0x137b   :  { %3647 = vst.msk [vmem:[#allocation7] sm:$0xff] %vm79_vm0, %v3645_v46 }
0x137c   :  { %4280 = shalt.err (!%p4277_p0)
}
0x137d   :  { %3660 = dma.vmem_to_hbm [thread:$0]  %s3655_s19, 256, %s4968_s6, [#allocation4], %s4296_s24, %s4296_s24, %s4297_s25  }
0x137e   :  { %4293 = dma.done.wait [#allocation4], 256  }
0x137f   :  { %4294 = vsyncadd [#allocation4], 4294967040 }
0x1380   :  { %3664 = vsyncpa [#allocation3], 1 }
0x1381   :  { %3665 = vsyncpa [#allocation6], 1 }
0x1382   :  { %3666 = vsyncpa [#allocation4], 1 }

</bundles_post_ra>
